<compile_context>
chip_gen: v7x
topology: tpu7x:2x2x1
jax: 0.10.0
libtpu: 0.0.40
codegen_flags: <defaults>
</compile_context>

<pallas_src>
import numpy as np
import jax
import jax.numpy as jnp
from jax import lax
from jax.experimental import pallas as pl
from jax.experimental.pallas import tpu as pltpu

HIGHEST = lax.Precision.HIGHEST   # used by the pure-JAX reference only
KSIZE = 5                         # Conv1d kernel_size in the residual blocks
PAD = KSIZE // 2                  # padding=2 -> "same"


# --------------------------------------------------------------------------- #
# Fused Pallas kernel: stem conv + all residual blocks + maxpools + final FC
# --------------------------------------------------------------------------- #
def _dpcnn_fused_kernel(x_ref, cw_ref, cb_ref, w1_ref, b1_ref, w2_ref, b2_ref,
                        ow_ref, ob_ref, o_ref, scr_ref):
    # x_ref  : [Bt*S0, E]       bf16  embedded tokens, batch folded into sublanes
    # cw_ref : [E, H]           bf16  stem Conv1d(k=1) weight;  cb_ref: [1, H] f32
    # w1_ref : [NL, KSIZE*H, H] bf16  tap-concatenated conv1 weight per layer
    # b1_ref : [NL, 1, H]       f32
    # w2_ref : [NL, KSIZE*H, H] bf16; b2_ref: [NL, 1, H] f32
    # ow_ref : [H, L]           bf16  final Linear weight;      ob_ref: [1, L] f32
    # o_ref  : [Bt, L]          f32   logits for this batch tile (lane-dense)
    # scr_ref: [Bt*S0+2*PAD, H] f32   staging for conv-tap shifts & pooling
    Bt = o_ref.shape[0]
    BS0 = x_ref.shape[0]
    S0 = BS0 // Bt
    H = cw_ref.shape[1]
    num_layers = b1_ref.shape[0]
    bf16 = jnp.bfloat16

    # Stem: Conv1d(E -> H, kernel_size=1) == dense matmul on the [Bt*S, E] slab.
    h = (jnp.dot(x_ref[...], cw_ref[...],
                 preferred_element_type=jnp.float32) + cb_ref[...])

    def conv5(h_relu, w_ref, b_ref, layer, s_cur, masks):
        """'same' Conv1d(k=5, padding=2) on the flattened [Bt*s_cur, H] slab,
        realized as ONE fused matmul with contraction ntaps*H."""
        bs = Bt * s_cur
        n_half = min(PAD, s_cur - 1)       # taps with |d| >= s_cur are all zero
        k_lo, k_hi = PAD - n_half, PAD + n_half
        if n_half == 0:
            x_cat = h_relu                 # length-1 sequences: centre tap only
        else:
            # Stage the conv input once; shifted taps are cheap offset re-reads
            # of the same VMEM buffer (no shift-matrix matmuls, no extra MXU
            # passes).  Stale / pad / cross-batch rows are masked below.
            scr_ref[pl.ds(PAD, bs), :] = h_relu
            taps = []
            for k in range(k_lo, k_hi + 1):
                d = k - PAD
                if d == 0:
                    taps.append(h_relu)
                else:
                    raw = scr_ref[pl.ds(PAD + d, bs), :]
                    taps.append(jnp.where(masks[d], raw, 0.0))
            # Lane-concatenate the taps -> one [bs, ntaps*H] operand, a single
            # f32->bf16 cast, a single MXU matmul per conv.
            x_cat = jnp.concatenate(taps, axis=-1)
        w_band = w_ref[layer, k_lo * H:(k_hi + 1) * H, :]
        acc = jnp.dot(x_cat.astype(bf16), w_band,
                      preferred_element_type=jnp.float32)
        return acc + b_ref[layer]

    s_cur = S0
    for i in range(num_layers):
        bs = Bt * s_cur
        # Hoist iota / position / validity masks once per layer (shared by both
        # convs of the block; JAX does not CSE broadcast_in_dim).
        masks = {}
        if s_cur > 1:
            s_loc = lax.broadcasted_iota(jnp.int32, (bs, H), 0) % s_cur
            for d in range(-min(PAD, s_cur - 1), min(PAD, s_cur - 1) + 1):
                if d == 0:
                    continue
                # valid <=> 0 <= s_loc + d < s_cur  (zero padding, and blocks
                # cross-batch leakage inside the flattened slab)
                masks[d] = (s_loc >= -d) if d < 0 else (s_loc < s_cur - d)
        # nn.Sequential(ReLU, Conv1d, ReLU, Conv1d) + residual add (f32 stream).
        r = conv5(jnp.maximum(h, 0.0), w1_ref, b1_ref, i, s_cur, masks)
        r = conv5(jnp.maximum(r, 0.0), w2_ref, b2_ref, i, s_cur, masks)
        h = h + r
        if i < num_layers - 1:
            # MaxPool1d(2): one staging store + two stride-2 sublane reads + max.
            scr_ref[pl.ds(0, bs), :] = h
            even = scr_ref[pl.ds(0, bs // 2, stride=2), :]
            odd = scr_ref[pl.ds(1, bs // 2, stride=2), :]
            h = jnp.maximum(even, odd)
            s_cur //= 2

    # s_cur == 1 here, so h is [Bt, H]: squeeze(dim=-1) + final Linear.
    o_ref[...] = (jnp.dot(h.astype(bf16), ow_ref[...],
                          preferred_element_type=jnp.float32) + ob_ref[...])


# --------------------------------------------------------------------------- #
# Wrapper: batch-tiled parallel grid, one fused kernel per batch tile
# --------------------------------------------------------------------------- #
def _default_batch_tile(B, S):
    """Largest multiple-of-8 divisor of B keeping per-tile rows modest."""
    if B <= 8 or B % 8 != 0:
        return B
    bt = 8
    while bt * 2 <= B and B % (bt * 2) == 0 and (bt * 2) * S <= 512:
        bt *= 2
    return bt


def dpcnn4code2_forward(tokens, params, *, batch_tile=None):
    # nn.Embedding lookup: plain-JAX gather (glue), not the kernel hot path.
    # TODO(synk): pull the gather into the kernel via scalar-prefetched token
    # ids + manual DMA if the embedding fetch ever becomes hot.
    x = params["embedding"][tokens]                     # [B, S, E] f32
    B, S, E = x.shape
    H = params["cnn_w"].shape[1]
    L = params["out_w"].shape[1]
    nl = len(params["blocks"])
    # torch: output.squeeze(dim=-1) requires the sequence to reduce to 1.
    assert S == 2 ** (nl - 1), "sequence must reduce to 1 for the final Linear"
    if batch_tile is None:
        batch_tile = _default_batch_tile(B, S)
    assert B % batch_tile == 0, "batch_tile must divide the batch"

    bf = jnp.bfloat16
    # bf16 activations into the kernel: identical values to the in-kernel cast
    # the MXU needs anyway, half the HBM->VMEM bytes.
    x2d = x.reshape(B * S, E).astype(bf)                # fold batch -> sublanes
    # Tap-concatenated conv weights: one [KSIZE*H, H] slab per layer so each
    # conv is a single matmul with contraction KSIZE*H (WIO layout preserved).
    w1 = jnp.stack([blk[0] for blk in params["blocks"]]).reshape(nl, KSIZE * H, H)
    b1 = jnp.stack([blk[1] for blk in params["blocks"]])          # [nl, 1, H]
    w2 = jnp.stack([blk[2] for blk in params["blocks"]]).reshape(nl, KSIZE * H, H)
    b2 = jnp.stack([blk[3] for blk in params["blocks"]])          # [nl, 1, H]

    return pl.pallas_call(
        _dpcnn_fused_kernel,
        out_shape=jax.ShapeDtypeStruct((B, L), jnp.float32),
        grid=(B // batch_tile,),
        in_specs=[
            pl.BlockSpec((batch_tile * S, E), lambda i: (i, 0)),   # x tile
            pl.BlockSpec((E, H), lambda i: (0, 0)),                # stem weight
            pl.BlockSpec((1, H), lambda i: (0, 0)),
            pl.BlockSpec((nl, KSIZE * H, H), lambda i: (0, 0, 0)), # conv1 (fused)
            pl.BlockSpec((nl, 1, H), lambda i: (0, 0, 0)),
            pl.BlockSpec((nl, KSIZE * H, H), lambda i: (0, 0, 0)), # conv2 (fused)
            pl.BlockSpec((nl, 1, H), lambda i: (0, 0, 0)),
            pl.BlockSpec((H, L), lambda i: (0, 0)),                # final Linear
            pl.BlockSpec((1, L), lambda i: (0, 0)),
        ],
        out_specs=pl.BlockSpec((batch_tile, L), lambda i: (i, 0)),
        scratch_shapes=[pltpu.VMEM((batch_tile * S + 2 * PAD, H), jnp.float32)],
        compiler_params=pltpu.CompilerParams(
            dimension_semantics=("parallel",)),
    )(x2d, params["cnn_w"].astype(bf), params["cnn_b"],
      w1.astype(bf), b1, w2.astype(bf), b2,
      params["out_w"].astype(bf), params["out_b"])


# --------------------------------------------------------------------------- #
# Parameters (deterministic synthetic init) and pure-JAX reference
# --------------------------------------------------------------------------- #
def init_params(key, *, vocab_size, token_ebd_size, code_ebd_size,
                num_layers, num_labels, padding_value):
    E, H, L = token_ebd_size, code_ebd_size, num_labels
    k_emb, k_cw, k_cb, k_ow, k_ob, k_blk = jax.random.split(key, 6)
    emb = jax.random.normal(k_emb, (vocab_size, E), jnp.float32)
    emb = emb.at[padding_value].set(0.0)            # nn.Embedding padding_idx row
    cnn_w = jax.random.normal(k_cw, (E, H), jnp.float32) / np.sqrt(E)
    cnn_b = 0.01 * jax.random.normal(k_cb, (1, H), jnp.float32)
    out_w = jax.random.normal(k_ow, (H, L), jnp.float32) / np.sqrt(H)
    out_b = 0.01 * jax.random.normal(k_ob, (1, L), jnp.float32)
    blocks = []
    bkeys = jax.random.split(k_blk, num_layers * 4)
    for i in range(num_layers):
        kw1, kb1, kw2, kb2 = bkeys[4 * i: 4 * i + 4]
        w1 = jax.random.normal(kw1, (KSIZE, H, H), jnp.float32) / np.sqrt(KSIZE * H)
        b1 = 0.01 * jax.random.normal(kb1, (1, H), jnp.float32)
        w2 = jax.random.normal(kw2, (KSIZE, H, H), jnp.float32) / np.sqrt(KSIZE * H)
        b2 = 0.01 * jax.random.normal(kb2, (1, H), jnp.float32)
        blocks.append((w1, b1, w2, b2))
    return dict(embedding=emb, cnn_w=cnn_w, cnn_b=cnn_b,
                out_w=out_w, out_b=out_b, blocks=blocks)


def dpcnn4code2_reference(tokens, params):
    # Pure-JAX f32 (HIGHEST) reference for correctness checking only.
    x = params["embedding"][tokens]
    h = jnp.einsum("bse,eh->bsh", x, params["cnn_w"],
                   precision=HIGHEST) + params["cnn_b"]
    n = len(params["blocks"])
    dn = ("NWC", "WIO", "NWC")
    for i, (w1, b1, w2, b2) in enumerate(params["blocks"]):
        r = jax.nn.relu(h)
        r = lax.conv_general_dilated(r, w1, (1,), [(PAD, PAD)],
                                     dimension_numbers=dn,
                                     precision=HIGHEST) + b1
        r = jax.nn.relu(r)
        r = lax.conv_general_dilated(r, w2, (1,), [(PAD, PAD)],
                                     dimension_numbers=dn,
                                     precision=HIGHEST) + b2
        h = h + r
        if i < n - 1:
            B, S, C = h.shape
            h = jnp.max(h[:, :(S // 2) * 2, :].reshape(B, S // 2, 2, C), axis=2)
    h = h[:, 0, :]
    return jnp.dot(h, params["out_w"], precision=HIGHEST) + params["out_b"]


if __name__ == "__main__":
    # Small shapes consistent with DPCNN4Code2: seq length 8 halves to 1 across
    # num_layers-1 = 3 downsample blocks, as the final Linear requires.
    # B=16 with batch_tile=8 exercises the batch-tiled parallel grid (2 tiles).
    B, S = 16, 8
    vocab_size, token_ebd_size, code_ebd_size = 64, 16, 32
    num_layers, num_labels, padding_value = 4, 128, 0

    key = jax.random.PRNGKey(0)
    k_tok, k_par = jax.random.split(key)
    tokens = jax.random.randint(k_tok, (B, S), 0, vocab_size, dtype=jnp.int32)
    params = init_params(
        k_par, vocab_size=vocab_size, token_ebd_size=token_ebd_size,
        code_ebd_size=code_ebd_size, num_layers=num_layers,
        num_labels=num_labels, padding_value=padding_value)

    fwd = jax.jit(lambda t, p: dpcnn4code2_forward(t, p, batch_tile=8))
    out = jax.block_until_ready(fwd(tokens, params))
    assert out.shape == (B, num_labels) and out.dtype == jnp.float32

    ref = jax.block_until_ready(dpcnn4code2_reference(tokens, params))
    # Tolerance accounts for bf16 MXU operands (f32 accumulation) in the fused
    # kernel vs. the f32 HIGHEST reference across ~10 chained matmul layers;
    # structural bugs would produce O(1) errors and still be caught.
    np.testing.assert_allclose(np.asarray(out), np.asarray(ref),
                               rtol=5e-2, atol=2e-1)
    print("KERNEL_OK")
</pallas_src>

<mosaic_0001>
module attributes {stable_mosaic.version = 11 : i64} {
  func.func @_dpcnn_fused_kernel(%arg0: i32, %arg1: memref<64x16xbf16, #tpu.memory_space<vmem>>, %arg2: memref<16x32xbf16, #tpu.memory_space<vmem>>, %arg3: memref<1x32xf32, #tpu.memory_space<vmem>>, %arg4: memref<4x160x32xbf16, #tpu.memory_space<vmem>>, %arg5: memref<4x1x32xf32, #tpu.memory_space<vmem>>, %arg6: memref<4x160x32xbf16, #tpu.memory_space<vmem>>, %arg7: memref<4x1x32xf32, #tpu.memory_space<vmem>>, %arg8: memref<32x128xbf16, #tpu.memory_space<vmem>>, %arg9: memref<1x128xf32, #tpu.memory_space<vmem>>, %arg10: memref<8x128xf32, #tpu.memory_space<vmem>>, %arg11: memref<68x32xf32, #tpu.memory_space<vmem>>) attributes {dimension_semantics = [#tpu.dimension_semantics<parallel>], iteration_bounds = array<i64: 2>, scalar_prefetch = 0 : i64, scratch_operands = 1 : i64, tpu.core_type = #tpu.core_type<tc>, window_params = [{transform_indices = @transform_0, window_bounds = array<i64: 64, 16>}, {pipeline_mode = #tpu.pipeline_mode<synchronous>, transform_indices = @transform_1, window_bounds = array<i64: 16, 32>}, {pipeline_mode = #tpu.pipeline_mode<synchronous>, transform_indices = @transform_2, window_bounds = array<i64: 1, 32>}, {pipeline_mode = #tpu.pipeline_mode<synchronous>, transform_indices = @transform_3, window_bounds = array<i64: 4, 160, 32>}, {pipeline_mode = #tpu.pipeline_mode<synchronous>, transform_indices = @transform_4, window_bounds = array<i64: 4, 1, 32>}, {pipeline_mode = #tpu.pipeline_mode<synchronous>, transform_indices = @transform_5, window_bounds = array<i64: 4, 160, 32>}, {pipeline_mode = #tpu.pipeline_mode<synchronous>, transform_indices = @transform_6, window_bounds = array<i64: 4, 1, 32>}, {pipeline_mode = #tpu.pipeline_mode<synchronous>, transform_indices = @transform_7, window_bounds = array<i64: 32, 128>}, {pipeline_mode = #tpu.pipeline_mode<synchronous>, transform_indices = @transform_8, window_bounds = array<i64: 1, 128>}, {transform_indices = @transform_9, window_bounds = array<i64: 8, 128>}]} {
    %c0 = arith.constant 0 : index
    %c0_0 = arith.constant 0 : index
    %0 = vector.load %arg1[%c0, %c0_0] : memref<64x16xbf16, #tpu.memory_space<vmem>>, vector<64x16xbf16>
    %c0_1 = arith.constant 0 : index
    %c0_2 = arith.constant 0 : index
    %1 = vector.load %arg2[%c0_1, %c0_2] : memref<16x32xbf16, #tpu.memory_space<vmem>>, vector<16x32xbf16>
    %cst = arith.constant dense<0.000000e+00> : vector<64x32xf32>
    %2 = tpu.matmul %0, %1, %cst {dimension_numbers = #tpu.dot_dimension_numbers<[1], [0], [0], [1], [0, 0, 1, 1], [], []>} : vector<64x16xbf16>, vector<16x32xbf16>, vector<64x32xf32> -> vector<64x32xf32>
    %c0_3 = arith.constant 0 : index
    %c0_4 = arith.constant 0 : index
    %3 = vector.load %arg3[%c0_3, %c0_4] : memref<1x32xf32, #tpu.memory_space<vmem>>, vector<1x32xf32>
    %4 = vector.broadcast %3 : vector<1x32xf32> to vector<64x32xf32>
    %5 = arith.addf %2, %4 : vector<64x32xf32>
    %6 = tpu.iota {dimensions = array<i32: 0>} : vector<64x32xi32>
    %c8_i32 = arith.constant 8 : i32
    %c0_i32 = arith.constant 0 : i32
    %7 = arith.cmpi eq, %c8_i32, %c0_i32 : i32
    %c1_i32 = arith.constant 1 : i32
    %8 = arith.select %7, %c1_i32, %c8_i32 : i32
    %9 = vector.broadcast %8 : i32 to vector<64x32xi32>
    %10 = arith.remsi %6, %9 : vector<64x32xi32>
    %c0_i32_5 = arith.constant 0 : i32
    %11 = vector.broadcast %c0_i32_5 : i32 to vector<64x32xi32>
    %12 = arith.cmpi ne, %10, %11 : vector<64x32xi32>
    %c0_i32_6 = arith.constant 0 : i32
    %13 = vector.broadcast %c0_i32_6 : i32 to vector<64x32xi32>
    %14 = arith.cmpi slt, %10, %13 : vector<64x32xi32>
    %c0_i32_7 = arith.constant 0 : i32
    %15 = arith.cmpi slt, %8, %c0_i32_7 : i32
    %16 = vector.broadcast %15 : i1 to vector<64x32xi1>
    %17 = vector.broadcast %16 : vector<64x32xi1> to vector<64x32xi1>
    %18 = arith.xori %14, %17 : vector<64x32xi1>
    %19 = arith.andi %18, %12 : vector<64x32xi1>
    %20 = vector.broadcast %8 : i32 to vector<64x32xi32>
    %21 = arith.addi %10, %20 : vector<64x32xi32>
    %22 = arith.select %19, %21, %10 : vector<64x32xi1>, vector<64x32xi32>
    %c2_i32 = arith.constant 2 : i32
    %23 = vector.broadcast %c2_i32 : i32 to vector<64x32xi32>
    %24 = arith.cmpi sge, %22, %23 : vector<64x32xi32>
    %c1_i32_8 = arith.constant 1 : i32
    %25 = vector.broadcast %c1_i32_8 : i32 to vector<64x32xi32>
    %26 = arith.cmpi sge, %22, %25 : vector<64x32xi32>
    %c7_i32 = arith.constant 7 : i32
    %27 = vector.broadcast %c7_i32 : i32 to vector<64x32xi32>
    %28 = arith.cmpi slt, %22, %27 : vector<64x32xi32>
    %c6_i32 = arith.constant 6 : i32
    %29 = vector.broadcast %c6_i32 : i32 to vector<64x32xi32>
    %30 = arith.cmpi slt, %22, %29 : vector<64x32xi32>
    %cst_9 = arith.constant 0.000000e+00 : f32
    %31 = vector.broadcast %cst_9 : f32 to vector<64x32xf32>
    %32 = arith.maximumf %5, %31 : vector<64x32xf32>
    %c2 = arith.constant 2 : index
    %c0_10 = arith.constant 0 : index
    %33 = vector.load %arg11[%c2, %c0_10] : memref<68x32xf32, #tpu.memory_space<vmem>>, vector<64x32xf32>
    tpu.vector_store %arg11[%c2, %c0_10], %32 {strides = array<i32>} : memref<68x32xf32, #tpu.memory_space<vmem>>, vector<64x32xf32>,
    %c0_11 = arith.constant 0 : index
    %c0_12 = arith.constant 0 : index
    %34 = vector.load %arg11[%c0_11, %c0_12] : memref<68x32xf32, #tpu.memory_space<vmem>>, vector<64x32xf32>
    %cst_13 = arith.constant 0.000000e+00 : f32
    %35 = vector.broadcast %cst_13 : f32 to vector<64x32xf32>
    %36 = arith.select %24, %34, %35 : vector<64x32xi1>, vector<64x32xf32>
    %c1 = arith.constant 1 : index
    %c0_14 = arith.constant 0 : index
    %37 = vector.load %arg11[%c1, %c0_14] : memref<68x32xf32, #tpu.memory_space<vmem>>, vector<64x32xf32>
    %cst_15 = arith.constant 0.000000e+00 : f32
    %38 = vector.broadcast %cst_15 : f32 to vector<64x32xf32>
    %39 = arith.select %26, %37, %38 : vector<64x32xi1>, vector<64x32xf32>
    %c3 = arith.constant 3 : index
    %c0_16 = arith.constant 0 : index
    %40 = vector.load %arg11[%c3, %c0_16] : memref<68x32xf32, #tpu.memory_space<vmem>>, vector<64x32xf32>
    %cst_17 = arith.constant 0.000000e+00 : f32
    %41 = vector.broadcast %cst_17 : f32 to vector<64x32xf32>
    %42 = arith.select %28, %40, %41 : vector<64x32xi1>, vector<64x32xf32>
    %c4 = arith.constant 4 : index
    %c0_18 = arith.constant 0 : index
    %43 = vector.load %arg11[%c4, %c0_18] : memref<68x32xf32, #tpu.memory_space<vmem>>, vector<64x32xf32>
    %cst_19 = arith.constant 0.000000e+00 : f32
    %44 = vector.broadcast %cst_19 : f32 to vector<64x32xf32>
    %45 = arith.select %30, %43, %44 : vector<64x32xi1>, vector<64x32xf32>
    %46 = tpu.concatenate %36, %39, %32, %42, %45 in 1 : vector<64x32xf32>, vector<64x32xf32>, vector<64x32xf32>, vector<64x32xf32>, vector<64x32xf32> -> vector<64x160xf32>
    %c0_20 = arith.constant 0 : index
    %c0_21 = arith.constant 0 : index
    %c0_22 = arith.constant 0 : index
    %47 = vector.load %arg4[%c0_20, %c0_21, %c0_22] : memref<4x160x32xbf16, #tpu.memory_space<vmem>>, vector<1x160x32xbf16>
    %48 = vector.shape_cast %47 : vector<1x160x32xbf16> to vector<160x32xbf16>
    %49 = arith.truncf %46 : vector<64x160xf32> to vector<64x160xbf16>
    %cst_23 = arith.constant dense<0.000000e+00> : vector<64x32xf32>
    %50 = tpu.matmul %49, %48, %cst_23 {dimension_numbers = #tpu.dot_dimension_numbers<[1], [0], [0], [1], [0, 0, 1, 1], [], []>} : vector<64x160xbf16>, vector<160x32xbf16>, vector<64x32xf32> -> vector<64x32xf32>
    %c0_24 = arith.constant 0 : index
    %c0_25 = arith.constant 0 : index
    %c0_26 = arith.constant 0 : index
    %51 = vector.load %arg5[%c0_24, %c0_25, %c0_26] : memref<4x1x32xf32, #tpu.memory_space<vmem>>, vector<1x1x32xf32>
    %52 = vector.shape_cast %51 : vector<1x1x32xf32> to vector<1x32xf32>
    %53 = vector.broadcast %52 : vector<1x32xf32> to vector<64x32xf32>
    %54 = arith.addf %50, %53 : vector<64x32xf32>
    %cst_27 = arith.constant 0.000000e+00 : f32
    %55 = vector.broadcast %cst_27 : f32 to vector<64x32xf32>
    %56 = arith.maximumf %54, %55 : vector<64x32xf32>
    %c2_28 = arith.constant 2 : index
    %c0_29 = arith.constant 0 : index
    %57 = vector.load %arg11[%c2_28, %c0_29] : memref<68x32xf32, #tpu.memory_space<vmem>>, vector<64x32xf32>
    tpu.vector_store %arg11[%c2_28, %c0_29], %56 {strides = array<i32>} : memref<68x32xf32, #tpu.memory_space<vmem>>, vector<64x32xf32>,
    %c0_30 = arith.constant 0 : index
    %c0_31 = arith.constant 0 : index
    %58 = vector.load %arg11[%c0_30, %c0_31] : memref<68x32xf32, #tpu.memory_space<vmem>>, vector<64x32xf32>
    %cst_32 = arith.constant 0.000000e+00 : f32
    %59 = vector.broadcast %cst_32 : f32 to vector<64x32xf32>
    %60 = arith.select %24, %58, %59 : vector<64x32xi1>, vector<64x32xf32>
    %c1_33 = arith.constant 1 : index
    %c0_34 = arith.constant 0 : index
    %61 = vector.load %arg11[%c1_33, %c0_34] : memref<68x32xf32, #tpu.memory_space<vmem>>, vector<64x32xf32>
    %cst_35 = arith.constant 0.000000e+00 : f32
    %62 = vector.broadcast %cst_35 : f32 to vector<64x32xf32>
    %63 = arith.select %26, %61, %62 : vector<64x32xi1>, vector<64x32xf32>
    %c3_36 = arith.constant 3 : index
    %c0_37 = arith.constant 0 : index
    %64 = vector.load %arg11[%c3_36, %c0_37] : memref<68x32xf32, #tpu.memory_space<vmem>>, vector<64x32xf32>
    %cst_38 = arith.constant 0.000000e+00 : f32
    %65 = vector.broadcast %cst_38 : f32 to vector<64x32xf32>
    %66 = arith.select %28, %64, %65 : vector<64x32xi1>, vector<64x32xf32>
    %c4_39 = arith.constant 4 : index
    %c0_40 = arith.constant 0 : index
    %67 = vector.load %arg11[%c4_39, %c0_40] : memref<68x32xf32, #tpu.memory_space<vmem>>, vector<64x32xf32>
    %cst_41 = arith.constant 0.000000e+00 : f32
    %68 = vector.broadcast %cst_41 : f32 to vector<64x32xf32>
    %69 = arith.select %30, %67, %68 : vector<64x32xi1>, vector<64x32xf32>
    %70 = tpu.concatenate %60, %63, %56, %66, %69 in 1 : vector<64x32xf32>, vector<64x32xf32>, vector<64x32xf32>, vector<64x32xf32>, vector<64x32xf32> -> vector<64x160xf32>
    %c0_42 = arith.constant 0 : index
    %c0_43 = arith.constant 0 : index
    %c0_44 = arith.constant 0 : index
    %71 = vector.load %arg6[%c0_42, %c0_43, %c0_44] : memref<4x160x32xbf16, #tpu.memory_space<vmem>>, vector<1x160x32xbf16>
    %72 = vector.shape_cast %71 : vector<1x160x32xbf16> to vector<160x32xbf16>
    %73 = arith.truncf %70 : vector<64x160xf32> to vector<64x160xbf16>
    %cst_45 = arith.constant dense<0.000000e+00> : vector<64x32xf32>
    %74 = tpu.matmul %73, %72, %cst_45 {dimension_numbers = #tpu.dot_dimension_numbers<[1], [0], [0], [1], [0, 0, 1, 1], [], []>} : vector<64x160xbf16>, vector<160x32xbf16>, vector<64x32xf32> -> vector<64x32xf32>
    %c0_46 = arith.constant 0 : index
    %c0_47 = arith.constant 0 : index
    %c0_48 = arith.constant 0 : index
    %75 = vector.load %arg7[%c0_46, %c0_47, %c0_48] : memref<4x1x32xf32, #tpu.memory_space<vmem>>, vector<1x1x32xf32>
    %76 = vector.shape_cast %75 : vector<1x1x32xf32> to vector<1x32xf32>
    %77 = vector.broadcast %76 : vector<1x32xf32> to vector<64x32xf32>
    %78 = arith.addf %74, %77 : vector<64x32xf32>
    %79 = arith.addf %5, %78 : vector<64x32xf32>
    %c0_49 = arith.constant 0 : index
    %c0_50 = arith.constant 0 : index
    %80 = vector.load %arg11[%c0_49, %c0_50] : memref<68x32xf32, #tpu.memory_space<vmem>>, vector<64x32xf32>
    tpu.vector_store %arg11[%c0_49, %c0_50], %79 {strides = array<i32>} : memref<68x32xf32, #tpu.memory_space<vmem>>, vector<64x32xf32>,
    %c0_51 = arith.constant 0 : index
    %c0_52 = arith.constant 0 : index
    %81 = tpu.strided_load %arg11[%c0_51, %c0_52] {strides = array<i32: 2, 1>} : memref<68x32xf32, #tpu.memory_space<vmem>>, vector<32x32xf32>
    %c1_53 = arith.constant 1 : index
    %c0_54 = arith.constant 0 : index
    %82 = tpu.strided_load %arg11[%c1_53, %c0_54] {strides = array<i32: 2, 1>} : memref<68x32xf32, #tpu.memory_space<vmem>>, vector<32x32xf32>
    %83 = arith.maximumf %81, %82 : vector<32x32xf32>
    %84 = tpu.iota {dimensions = array<i32: 0>} : vector<32x32xi32>
    %c4_i32 = arith.constant 4 : i32
    %c0_i32_55 = arith.constant 0 : i32
    %85 = arith.cmpi eq, %c4_i32, %c0_i32_55 : i32
    %c1_i32_56 = arith.constant 1 : i32
    %86 = arith.select %85, %c1_i32_56, %c4_i32 : i32
    %87 = vector.broadcast %86 : i32 to vector<32x32xi32>
    %88 = arith.remsi %84, %87 : vector<32x32xi32>
    %c0_i32_57 = arith.constant 0 : i32
    %89 = vector.broadcast %c0_i32_57 : i32 to vector<32x32xi32>
    %90 = arith.cmpi ne, %88, %89 : vector<32x32xi32>
    %c0_i32_58 = arith.constant 0 : i32
    %91 = vector.broadcast %c0_i32_58 : i32 to vector<32x32xi32>
    %92 = arith.cmpi slt, %88, %91 : vector<32x32xi32>
    %c0_i32_59 = arith.constant 0 : i32
    %93 = arith.cmpi slt, %86, %c0_i32_59 : i32
    %94 = vector.broadcast %93 : i1 to vector<32x32xi1>
    %95 = vector.broadcast %94 : vector<32x32xi1> to vector<32x32xi1>
    %96 = arith.xori %92, %95 : vector<32x32xi1>
    %97 = arith.andi %96, %90 : vector<32x32xi1>
    %98 = vector.broadcast %86 : i32 to vector<32x32xi32>
    %99 = arith.addi %88, %98 : vector<32x32xi32>
    %100 = arith.select %97, %99, %88 : vector<32x32xi1>, vector<32x32xi32>
    %c2_i32_60 = arith.constant 2 : i32
    %101 = vector.broadcast %c2_i32_60 : i32 to vector<32x32xi32>
    %102 = arith.cmpi sge, %100, %101 : vector<32x32xi32>
    %c1_i32_61 = arith.constant 1 : i32
    %103 = vector.broadcast %c1_i32_61 : i32 to vector<32x32xi32>
    %104 = arith.cmpi sge, %100, %103 : vector<32x32xi32>
    %c3_i32 = arith.constant 3 : i32
    %105 = vector.broadcast %c3_i32 : i32 to vector<32x32xi32>
    %106 = arith.cmpi slt, %100, %105 : vector<32x32xi32>
    %c2_i32_62 = arith.constant 2 : i32
    %107 = vector.broadcast %c2_i32_62 : i32 to vector<32x32xi32>
    %108 = arith.cmpi slt, %100, %107 : vector<32x32xi32>
    %cst_63 = arith.constant 0.000000e+00 : f32
    %109 = vector.broadcast %cst_63 : f32 to vector<32x32xf32>
    %110 = arith.maximumf %83, %109 : vector<32x32xf32>
    %c2_64 = arith.constant 2 : index
    %c0_65 = arith.constant 0 : index
    %111 = vector.load %arg11[%c2_64, %c0_65] : memref<68x32xf32, #tpu.memory_space<vmem>>, vector<32x32xf32>
    tpu.vector_store %arg11[%c2_64, %c0_65], %110 {strides = array<i32>} : memref<68x32xf32, #tpu.memory_space<vmem>>, vector<32x32xf32>,
    %c0_66 = arith.constant 0 : index
    %c0_67 = arith.constant 0 : index
    %112 = vector.load %arg11[%c0_66, %c0_67] : memref<68x32xf32, #tpu.memory_space<vmem>>, vector<32x32xf32>
    %cst_68 = arith.constant 0.000000e+00 : f32
    %113 = vector.broadcast %cst_68 : f32 to vector<32x32xf32>
    %114 = arith.select %102, %112, %113 : vector<32x32xi1>, vector<32x32xf32>
    %c1_69 = arith.constant 1 : index
    %c0_70 = arith.constant 0 : index
    %115 = vector.load %arg11[%c1_69, %c0_70] : memref<68x32xf32, #tpu.memory_space<vmem>>, vector<32x32xf32>
    %cst_71 = arith.constant 0.000000e+00 : f32
    %116 = vector.broadcast %cst_71 : f32 to vector<32x32xf32>
    %117 = arith.select %104, %115, %116 : vector<32x32xi1>, vector<32x32xf32>
    %c3_72 = arith.constant 3 : index
    %c0_73 = arith.constant 0 : index
    %118 = vector.load %arg11[%c3_72, %c0_73] : memref<68x32xf32, #tpu.memory_space<vmem>>, vector<32x32xf32>
    %cst_74 = arith.constant 0.000000e+00 : f32
    %119 = vector.broadcast %cst_74 : f32 to vector<32x32xf32>
    %120 = arith.select %106, %118, %119 : vector<32x32xi1>, vector<32x32xf32>
    %c4_75 = arith.constant 4 : index
    %c0_76 = arith.constant 0 : index
    %121 = vector.load %arg11[%c4_75, %c0_76] : memref<68x32xf32, #tpu.memory_space<vmem>>, vector<32x32xf32>
    %cst_77 = arith.constant 0.000000e+00 : f32
    %122 = vector.broadcast %cst_77 : f32 to vector<32x32xf32>
    %123 = arith.select %108, %121, %122 : vector<32x32xi1>, vector<32x32xf32>
    %124 = tpu.concatenate %114, %117, %110, %120, %123 in 1 : vector<32x32xf32>, vector<32x32xf32>, vector<32x32xf32>, vector<32x32xf32>, vector<32x32xf32> -> vector<32x160xf32>
    %c1_78 = arith.constant 1 : index
    %c0_79 = arith.constant 0 : index
    %c0_80 = arith.constant 0 : index
    %125 = vector.load %arg4[%c1_78, %c0_79, %c0_80] : memref<4x160x32xbf16, #tpu.memory_space<vmem>>, vector<1x160x32xbf16>
    %126 = vector.shape_cast %125 : vector<1x160x32xbf16> to vector<160x32xbf16>
    %127 = arith.truncf %124 : vector<32x160xf32> to vector<32x160xbf16>
    %cst_81 = arith.constant dense<0.000000e+00> : vector<32x32xf32>
    %128 = tpu.matmul %127, %126, %cst_81 {dimension_numbers = #tpu.dot_dimension_numbers<[1], [0], [0], [1], [0, 0, 1, 1], [], []>} : vector<32x160xbf16>, vector<160x32xbf16>, vector<32x32xf32> -> vector<32x32xf32>
    %c1_82 = arith.constant 1 : index
    %c0_83 = arith.constant 0 : index
    %c0_84 = arith.constant 0 : index
    %129 = vector.load %arg5[%c1_82, %c0_83, %c0_84] : memref<4x1x32xf32, #tpu.memory_space<vmem>>, vector<1x1x32xf32>
    %130 = vector.shape_cast %129 : vector<1x1x32xf32> to vector<1x32xf32>
    %131 = vector.broadcast %130 : vector<1x32xf32> to vector<32x32xf32>
    %132 = arith.addf %128, %131 : vector<32x32xf32>
    %cst_85 = arith.constant 0.000000e+00 : f32
    %133 = vector.broadcast %cst_85 : f32 to vector<32x32xf32>
    %134 = arith.maximumf %132, %133 : vector<32x32xf32>
    %c2_86 = arith.constant 2 : index
    %c0_87 = arith.constant 0 : index
    %135 = vector.load %arg11[%c2_86, %c0_87] : memref<68x32xf32, #tpu.memory_space<vmem>>, vector<32x32xf32>
    tpu.vector_store %arg11[%c2_86, %c0_87], %134 {strides = array<i32>} : memref<68x32xf32, #tpu.memory_space<vmem>>, vector<32x32xf32>,
    %c0_88 = arith.constant 0 : index
    %c0_89 = arith.constant 0 : index
    %136 = vector.load %arg11[%c0_88, %c0_89] : memref<68x32xf32, #tpu.memory_space<vmem>>, vector<32x32xf32>
    %cst_90 = arith.constant 0.000000e+00 : f32
    %137 = vector.broadcast %cst_90 : f32 to vector<32x32xf32>
    %138 = arith.select %102, %136, %137 : vector<32x32xi1>, vector<32x32xf32>
    %c1_91 = arith.constant 1 : index
    %c0_92 = arith.constant 0 : index
    %139 = vector.load %arg11[%c1_91, %c0_92] : memref<68x32xf32, #tpu.memory_space<vmem>>, vector<32x32xf32>
    %cst_93 = arith.constant 0.000000e+00 : f32
    %140 = vector.broadcast %cst_93 : f32 to vector<32x32xf32>
    %141 = arith.select %104, %139, %140 : vector<32x32xi1>, vector<32x32xf32>
    %c3_94 = arith.constant 3 : index
    %c0_95 = arith.constant 0 : index
    %142 = vector.load %arg11[%c3_94, %c0_95] : memref<68x32xf32, #tpu.memory_space<vmem>>, vector<32x32xf32>
    %cst_96 = arith.constant 0.000000e+00 : f32
    %143 = vector.broadcast %cst_96 : f32 to vector<32x32xf32>
    %144 = arith.select %106, %142, %143 : vector<32x32xi1>, vector<32x32xf32>
    %c4_97 = arith.constant 4 : index
    %c0_98 = arith.constant 0 : index
    %145 = vector.load %arg11[%c4_97, %c0_98] : memref<68x32xf32, #tpu.memory_space<vmem>>, vector<32x32xf32>
    %cst_99 = arith.constant 0.000000e+00 : f32
    %146 = vector.broadcast %cst_99 : f32 to vector<32x32xf32>
    %147 = arith.select %108, %145, %146 : vector<32x32xi1>, vector<32x32xf32>
    %148 = tpu.concatenate %138, %141, %134, %144, %147 in 1 : vector<32x32xf32>, vector<32x32xf32>, vector<32x32xf32>, vector<32x32xf32>, vector<32x32xf32> -> vector<32x160xf32>
    %c1_100 = arith.constant 1 : index
    %c0_101 = arith.constant 0 : index
    %c0_102 = arith.constant 0 : index
    %149 = vector.load %arg6[%c1_100, %c0_101, %c0_102] : memref<4x160x32xbf16, #tpu.memory_space<vmem>>, vector<1x160x32xbf16>
    %150 = vector.shape_cast %149 : vector<1x160x32xbf16> to vector<160x32xbf16>
    %151 = arith.truncf %148 : vector<32x160xf32> to vector<32x160xbf16>
    %cst_103 = arith.constant dense<0.000000e+00> : vector<32x32xf32>
    %152 = tpu.matmul %151, %150, %cst_103 {dimension_numbers = #tpu.dot_dimension_numbers<[1], [0], [0], [1], [0, 0, 1, 1], [], []>} : vector<32x160xbf16>, vector<160x32xbf16>, vector<32x32xf32> -> vector<32x32xf32>
    %c1_104 = arith.constant 1 : index
    %c0_105 = arith.constant 0 : index
    %c0_106 = arith.constant 0 : index
    %153 = vector.load %arg7[%c1_104, %c0_105, %c0_106] : memref<4x1x32xf32, #tpu.memory_space<vmem>>, vector<1x1x32xf32>
    %154 = vector.shape_cast %153 : vector<1x1x32xf32> to vector<1x32xf32>
    %155 = vector.broadcast %154 : vector<1x32xf32> to vector<32x32xf32>
    %156 = arith.addf %152, %155 : vector<32x32xf32>
    %157 = arith.addf %83, %156 : vector<32x32xf32>
    %c0_107 = arith.constant 0 : index
    %c0_108 = arith.constant 0 : index
    %158 = vector.load %arg11[%c0_107, %c0_108] : memref<68x32xf32, #tpu.memory_space<vmem>>, vector<32x32xf32>
    tpu.vector_store %arg11[%c0_107, %c0_108], %157 {strides = array<i32>} : memref<68x32xf32, #tpu.memory_space<vmem>>, vector<32x32xf32>,
    %c0_109 = arith.constant 0 : index
    %c0_110 = arith.constant 0 : index
    %159 = tpu.strided_load %arg11[%c0_109, %c0_110] {strides = array<i32: 2, 1>} : memref<68x32xf32, #tpu.memory_space<vmem>>, vector<16x32xf32>
    %c1_111 = arith.constant 1 : index
    %c0_112 = arith.constant 0 : index
    %160 = tpu.strided_load %arg11[%c1_111, %c0_112] {strides = array<i32: 2, 1>} : memref<68x32xf32, #tpu.memory_space<vmem>>, vector<16x32xf32>
    %161 = arith.maximumf %159, %160 : vector<16x32xf32>
    %162 = tpu.iota {dimensions = array<i32: 0>} : vector<16x32xi32>
    %c2_i32_113 = arith.constant 2 : i32
    %c0_i32_114 = arith.constant 0 : i32
    %163 = arith.cmpi eq, %c2_i32_113, %c0_i32_114 : i32
    %c1_i32_115 = arith.constant 1 : i32
    %164 = arith.select %163, %c1_i32_115, %c2_i32_113 : i32
    %165 = vector.broadcast %164 : i32 to vector<16x32xi32>
    %166 = arith.remsi %162, %165 : vector<16x32xi32>
    %c0_i32_116 = arith.constant 0 : i32
    %167 = vector.broadcast %c0_i32_116 : i32 to vector<16x32xi32>
    %168 = arith.cmpi ne, %166, %167 : vector<16x32xi32>
    %c0_i32_117 = arith.constant 0 : i32
    %169 = vector.broadcast %c0_i32_117 : i32 to vector<16x32xi32>
    %170 = arith.cmpi slt, %166, %169 : vector<16x32xi32>
    %c0_i32_118 = arith.constant 0 : i32
    %171 = arith.cmpi slt, %164, %c0_i32_118 : i32
    %172 = vector.broadcast %171 : i1 to vector<16x32xi1>
    %173 = vector.broadcast %172 : vector<16x32xi1> to vector<16x32xi1>
    %174 = arith.xori %170, %173 : vector<16x32xi1>
    %175 = arith.andi %174, %168 : vector<16x32xi1>
    %176 = vector.broadcast %164 : i32 to vector<16x32xi32>
    %177 = arith.addi %166, %176 : vector<16x32xi32>
    %178 = arith.select %175, %177, %166 : vector<16x32xi1>, vector<16x32xi32>
    %c1_i32_119 = arith.constant 1 : i32
    %179 = vector.broadcast %c1_i32_119 : i32 to vector<16x32xi32>
    %180 = arith.cmpi sge, %178, %179 : vector<16x32xi32>
    %c1_i32_120 = arith.constant 1 : i32
    %181 = vector.broadcast %c1_i32_120 : i32 to vector<16x32xi32>
    %182 = arith.cmpi slt, %178, %181 : vector<16x32xi32>
    %cst_121 = arith.constant 0.000000e+00 : f32
    %183 = vector.broadcast %cst_121 : f32 to vector<16x32xf32>
    %184 = arith.maximumf %161, %183 : vector<16x32xf32>
    %c2_122 = arith.constant 2 : index
    %c0_123 = arith.constant 0 : index
    %185 = vector.load %arg11[%c2_122, %c0_123] : memref<68x32xf32, #tpu.memory_space<vmem>>, vector<16x32xf32>
    tpu.vector_store %arg11[%c2_122, %c0_123], %184 {strides = array<i32>} : memref<68x32xf32, #tpu.memory_space<vmem>>, vector<16x32xf32>,
    %c1_124 = arith.constant 1 : index
    %c0_125 = arith.constant 0 : index
    %186 = vector.load %arg11[%c1_124, %c0_125] : memref<68x32xf32, #tpu.memory_space<vmem>>, vector<16x32xf32>
    %cst_126 = arith.constant 0.000000e+00 : f32
    %187 = vector.broadcast %cst_126 : f32 to vector<16x32xf32>
    %188 = arith.select %180, %186, %187 : vector<16x32xi1>, vector<16x32xf32>
    %c3_127 = arith.constant 3 : index
    %c0_128 = arith.constant 0 : index
    %189 = vector.load %arg11[%c3_127, %c0_128] : memref<68x32xf32, #tpu.memory_space<vmem>>, vector<16x32xf32>
    %cst_129 = arith.constant 0.000000e+00 : f32
    %190 = vector.broadcast %cst_129 : f32 to vector<16x32xf32>
    %191 = arith.select %182, %189, %190 : vector<16x32xi1>, vector<16x32xf32>
    %192 = tpu.concatenate %188, %184, %191 in 1 : vector<16x32xf32>, vector<16x32xf32>, vector<16x32xf32> -> vector<16x96xf32>
    %c2_130 = arith.constant 2 : index
    %c32 = arith.constant 32 : index
    %c0_131 = arith.constant 0 : index
    %193 = vector.load %arg4[%c2_130, %c32, %c0_131] : memref<4x160x32xbf16, #tpu.memory_space<vmem>>, vector<1x96x32xbf16>
    %194 = vector.shape_cast %193 : vector<1x96x32xbf16> to vector<96x32xbf16>
    %195 = arith.truncf %192 : vector<16x96xf32> to vector<16x96xbf16>
    %cst_132 = arith.constant dense<0.000000e+00> : vector<16x32xf32>
    %196 = tpu.matmul %195, %194, %cst_132 {dimension_numbers = #tpu.dot_dimension_numbers<[1], [0], [0], [1], [0, 0, 1, 1], [], []>} : vector<16x96xbf16>, vector<96x32xbf16>, vector<16x32xf32> -> vector<16x32xf32>
    %c2_133 = arith.constant 2 : index
    %c0_134 = arith.constant 0 : index
    %c0_135 = arith.constant 0 : index
    %197 = vector.load %arg5[%c2_133, %c0_134, %c0_135] : memref<4x1x32xf32, #tpu.memory_space<vmem>>, vector<1x1x32xf32>
    %198 = vector.shape_cast %197 : vector<1x1x32xf32> to vector<1x32xf32>
    %199 = vector.broadcast %198 : vector<1x32xf32> to vector<16x32xf32>
    %200 = arith.addf %196, %199 : vector<16x32xf32>
    %cst_136 = arith.constant 0.000000e+00 : f32
    %201 = vector.broadcast %cst_136 : f32 to vector<16x32xf32>
    %202 = arith.maximumf %200, %201 : vector<16x32xf32>
    %c2_137 = arith.constant 2 : index
    %c0_138 = arith.constant 0 : index
    %203 = vector.load %arg11[%c2_137, %c0_138] : memref<68x32xf32, #tpu.memory_space<vmem>>, vector<16x32xf32>
    tpu.vector_store %arg11[%c2_137, %c0_138], %202 {strides = array<i32>} : memref<68x32xf32, #tpu.memory_space<vmem>>, vector<16x32xf32>,
    %c1_139 = arith.constant 1 : index
    %c0_140 = arith.constant 0 : index
    %204 = vector.load %arg11[%c1_139, %c0_140] : memref<68x32xf32, #tpu.memory_space<vmem>>, vector<16x32xf32>
    %cst_141 = arith.constant 0.000000e+00 : f32
    %205 = vector.broadcast %cst_141 : f32 to vector<16x32xf32>
    %206 = arith.select %180, %204, %205 : vector<16x32xi1>, vector<16x32xf32>
    %c3_142 = arith.constant 3 : index
    %c0_143 = arith.constant 0 : index
    %207 = vector.load %arg11[%c3_142, %c0_143] : memref<68x32xf32, #tpu.memory_space<vmem>>, vector<16x32xf32>
    %cst_144 = arith.constant 0.000000e+00 : f32
    %208 = vector.broadcast %cst_144 : f32 to vector<16x32xf32>
    %209 = arith.select %182, %207, %208 : vector<16x32xi1>, vector<16x32xf32>
    %210 = tpu.concatenate %206, %202, %209 in 1 : vector<16x32xf32>, vector<16x32xf32>, vector<16x32xf32> -> vector<16x96xf32>
    %c2_145 = arith.constant 2 : index
    %c32_146 = arith.constant 32 : index
    %c0_147 = arith.constant 0 : index
    %211 = vector.load %arg6[%c2_145, %c32_146, %c0_147] : memref<4x160x32xbf16, #tpu.memory_space<vmem>>, vector<1x96x32xbf16>
    %212 = vector.shape_cast %211 : vector<1x96x32xbf16> to vector<96x32xbf16>
    %213 = arith.truncf %210 : vector<16x96xf32> to vector<16x96xbf16>
    %cst_148 = arith.constant dense<0.000000e+00> : vector<16x32xf32>
    %214 = tpu.matmul %213, %212, %cst_148 {dimension_numbers = #tpu.dot_dimension_numbers<[1], [0], [0], [1], [0, 0, 1, 1], [], []>} : vector<16x96xbf16>, vector<96x32xbf16>, vector<16x32xf32> -> vector<16x32xf32>
    %c2_149 = arith.constant 2 : index
    %c0_150 = arith.constant 0 : index
    %c0_151 = arith.constant 0 : index
    %215 = vector.load %arg7[%c2_149, %c0_150, %c0_151] : memref<4x1x32xf32, #tpu.memory_space<vmem>>, vector<1x1x32xf32>
    %216 = vector.shape_cast %215 : vector<1x1x32xf32> to vector<1x32xf32>
    %217 = vector.broadcast %216 : vector<1x32xf32> to vector<16x32xf32>
    %218 = arith.addf %214, %217 : vector<16x32xf32>
    %219 = arith.addf %161, %218 : vector<16x32xf32>
    %c0_152 = arith.constant 0 : index
    %c0_153 = arith.constant 0 : index
    %220 = vector.load %arg11[%c0_152, %c0_153] : memref<68x32xf32, #tpu.memory_space<vmem>>, vector<16x32xf32>
    tpu.vector_store %arg11[%c0_152, %c0_153], %219 {strides = array<i32>} : memref<68x32xf32, #tpu.memory_space<vmem>>, vector<16x32xf32>,
    %c0_154 = arith.constant 0 : index
    %c0_155 = arith.constant 0 : index
    %221 = tpu.strided_load %arg11[%c0_154, %c0_155] {strides = array<i32: 2, 1>} : memref<68x32xf32, #tpu.memory_space<vmem>>, vector<8x32xf32>
    %c1_156 = arith.constant 1 : index
    %c0_157 = arith.constant 0 : index
    %222 = tpu.strided_load %arg11[%c1_156, %c0_157] {strides = array<i32: 2, 1>} : memref<68x32xf32, #tpu.memory_space<vmem>>, vector<8x32xf32>
    %223 = arith.maximumf %221, %222 : vector<8x32xf32>
    %cst_158 = arith.constant 0.000000e+00 : f32
    %224 = vector.broadcast %cst_158 : f32 to vector<8x32xf32>
    %225 = arith.maximumf %223, %224 : vector<8x32xf32>
    %c3_159 = arith.constant 3 : index
    %c64 = arith.constant 64 : index
    %c0_160 = arith.constant 0 : index
    %226 = vector.load %arg4[%c3_159, %c64, %c0_160] : memref<4x160x32xbf16, #tpu.memory_space<vmem>>, vector<1x32x32xbf16>
    %227 = vector.shape_cast %226 : vector<1x32x32xbf16> to vector<32x32xbf16>
    %228 = arith.truncf %225 : vector<8x32xf32> to vector<8x32xbf16>
    %cst_161 = arith.constant dense<0.000000e+00> : vector<8x32xf32>
    %229 = tpu.matmul %228, %227, %cst_161 {dimension_numbers = #tpu.dot_dimension_numbers<[1], [0], [0], [1], [0, 0, 1, 1], [], []>} : vector<8x32xbf16>, vector<32x32xbf16>, vector<8x32xf32> -> vector<8x32xf32>
    %c3_162 = arith.constant 3 : index
    %c0_163 = arith.constant 0 : index
    %c0_164 = arith.constant 0 : index
    %230 = vector.load %arg5[%c3_162, %c0_163, %c0_164] : memref<4x1x32xf32, #tpu.memory_space<vmem>>, vector<1x1x32xf32>
    %231 = vector.shape_cast %230 : vector<1x1x32xf32> to vector<1x32xf32>
    %232 = vector.broadcast %231 : vector<1x32xf32> to vector<8x32xf32>
    %233 = arith.addf %229, %232 : vector<8x32xf32>
    %cst_165 = arith.constant 0.000000e+00 : f32
    %234 = vector.broadcast %cst_165 : f32 to vector<8x32xf32>
    %235 = arith.maximumf %233, %234 : vector<8x32xf32>
    %c3_166 = arith.constant 3 : index
    %c64_167 = arith.constant 64 : index
    %c0_168 = arith.constant 0 : index
    %236 = vector.load %arg6[%c3_166, %c64_167, %c0_168] : memref<4x160x32xbf16, #tpu.memory_space<vmem>>, vector<1x32x32xbf16>
    %237 = vector.shape_cast %236 : vector<1x32x32xbf16> to vector<32x32xbf16>
    %238 = arith.truncf %235 : vector<8x32xf32> to vector<8x32xbf16>
    %cst_169 = arith.constant dense<0.000000e+00> : vector<8x32xf32>
    %239 = tpu.matmul %238, %237, %cst_169 {dimension_numbers = #tpu.dot_dimension_numbers<[1], [0], [0], [1], [0, 0, 1, 1], [], []>} : vector<8x32xbf16>, vector<32x32xbf16>, vector<8x32xf32> -> vector<8x32xf32>
    %c3_170 = arith.constant 3 : index
    %c0_171 = arith.constant 0 : index
    %c0_172 = arith.constant 0 : index
    %240 = vector.load %arg7[%c3_170, %c0_171, %c0_172] : memref<4x1x32xf32, #tpu.memory_space<vmem>>, vector<1x1x32xf32>
    %241 = vector.shape_cast %240 : vector<1x1x32xf32> to vector<1x32xf32>
    %242 = vector.broadcast %241 : vector<1x32xf32> to vector<8x32xf32>
    %243 = arith.addf %239, %242 : vector<8x32xf32>
    %244 = arith.addf %223, %243 : vector<8x32xf32>
    %245 = arith.truncf %244 : vector<8x32xf32> to vector<8x32xbf16>
    %c0_173 = arith.constant 0 : index
    %c0_174 = arith.constant 0 : index
    %246 = vector.load %arg8[%c0_173, %c0_174] : memref<32x128xbf16, #tpu.memory_space<vmem>>, vector<32x128xbf16>
    %cst_175 = arith.constant dense<0.000000e+00> : vector<8x128xf32>
    %247 = tpu.matmul %245, %246, %cst_175 {dimension_numbers = #tpu.dot_dimension_numbers<[1], [0], [0], [1], [0, 0, 1, 1], [], []>} : vector<8x32xbf16>, vector<32x128xbf16>, vector<8x128xf32> -> vector<8x128xf32>
    %c0_176 = arith.constant 0 : index
    %c0_177 = arith.constant 0 : index
    %248 = vector.load %arg9[%c0_176, %c0_177] : memref<1x128xf32, #tpu.memory_space<vmem>>, vector<1x128xf32>
    %249 = vector.broadcast %248 : vector<1x128xf32> to vector<8x128xf32>
    %250 = arith.addf %247, %249 : vector<8x128xf32>
    %c0_178 = arith.constant 0 : index
    %c0_179 = arith.constant 0 : index
    %251 = vector.load %arg10[%c0_178, %c0_179] : memref<8x128xf32, #tpu.memory_space<vmem>>, vector<8x128xf32>
    tpu.vector_store %arg10[%c0_178, %c0_179], %250 {strides = array<i32>} : memref<8x128xf32, #tpu.memory_space<vmem>>, vector<8x128xf32>,
    return
  }
  func.func @transform_0(%arg0: i32) -> (i32, i32) {
    %c0_i32 = arith.constant 0 : i32
    %c0_i32_0 = arith.constant 0 : i32
    return %arg0, %c0_i32 : i32, i32
  }
  func.func @transform_1(%arg0: i32) -> (i32, i32) {
    %c0_i32 = arith.constant 0 : i32
    %c0_i32_0 = arith.constant 0 : i32
    %c0_i32_1 = arith.constant 0 : i32
    return %c0_i32, %c0_i32_0 : i32, i32
  }
  func.func @transform_2(%arg0: i32) -> (i32, i32) {
    %c0_i32 = arith.constant 0 : i32
    %c0_i32_0 = arith.constant 0 : i32
    %c0_i32_1 = arith.constant 0 : i32
    return %c0_i32, %c0_i32_0 : i32, i32
  }
  func.func @transform_3(%arg0: i32) -> (i32, i32, i32) {
    %c0_i32 = arith.constant 0 : i32
    %c0_i32_0 = arith.constant 0 : i32
    %c0_i32_1 = arith.constant 0 : i32
    %c0_i32_2 = arith.constant 0 : i32
    return %c0_i32, %c0_i32_0, %c0_i32_1 : i32, i32, i32
  }
  func.func @transform_4(%arg0: i32) -> (i32, i32, i32) {
    %c0_i32 = arith.constant 0 : i32
    %c0_i32_0 = arith.constant 0 : i32
    %c0_i32_1 = arith.constant 0 : i32
    %c0_i32_2 = arith.constant 0 : i32
    return %c0_i32, %c0_i32_0, %c0_i32_1 : i32, i32, i32
  }
  func.func @transform_5(%arg0: i32) -> (i32, i32, i32) {
    %c0_i32 = arith.constant 0 : i32
    %c0_i32_0 = arith.constant 0 : i32
    %c0_i32_1 = arith.constant 0 : i32
    %c0_i32_2 = arith.constant 0 : i32
    return %c0_i32, %c0_i32_0, %c0_i32_1 : i32, i32, i32
  }
  func.func @transform_6(%arg0: i32) -> (i32, i32, i32) {
    %c0_i32 = arith.constant 0 : i32
    %c0_i32_0 = arith.constant 0 : i32
    %c0_i32_1 = arith.constant 0 : i32
    %c0_i32_2 = arith.constant 0 : i32
    return %c0_i32, %c0_i32_0, %c0_i32_1 : i32, i32, i32
  }
  func.func @transform_7(%arg0: i32) -> (i32, i32) {
    %c0_i32 = arith.constant 0 : i32
    %c0_i32_0 = arith.constant 0 : i32
    %c0_i32_1 = arith.constant 0 : i32
    return %c0_i32, %c0_i32_0 : i32, i32
  }
  func.func @transform_8(%arg0: i32) -> (i32, i32) {
    %c0_i32 = arith.constant 0 : i32
    %c0_i32_0 = arith.constant 0 : i32
    %c0_i32_1 = arith.constant 0 : i32
    return %c0_i32, %c0_i32_0 : i32, i32
  }
  func.func @transform_9(%arg0: i32) -> (i32, i32) {
    %c0_i32 = arith.constant 0 : i32
    %c0_i32_0 = arith.constant 0 : i32
    return %arg0, %c0_i32 : i32, i32
  }
}

</mosaic_0001>

<bundles_post_ra>
// kernel: _lambda_.1
= control target key start
LH: loop header
LB: loop body
LE: loop exit
PB: predicated region body
PF: predicated region fallthrough
CT: control target
= control target key end

     0   :  { %14 = vsyncpa [#allocation4], 0  ;;  %s4211_s0 = inlined_call_operand.vmem [shape: bf16[128,16], index: 0, kind: input, shape index: {}]   ;;  %s4212_s1 = inlined_call_operand.vmem [shape: bf16[16,32], index: 1, kind: input, shape index: {}]   ;;  %s4213_s2 = inlined_call_operand.vmem [shape: f32[1,32], index: 2, kind: input, shape index: {}]   ;;  %s4214_s3 = inlined_call_operand.vmem [shape: bf16[4,160,32], index: 3, kind: input, shape index: {}]   ;;  %s4215_s4 = inlined_call_operand.vmem [shape: f32[4,1,32], index: 4, kind: input, shape index: {}]   ;;  %s4216_s5 = inlined_call_operand.vmem [shape: bf16[4,160,32], index: 5, kind: input, shape index: {}]   ;;  %s4217_s6 = inlined_call_operand.vmem [shape: f32[4,1,32], index: 6, kind: input, shape index: {}]   ;;  %s4218_s7 = inlined_call_operand.vmem [shape: bf16[32,128], index: 7, kind: input, shape index: {}]   ;;  %s4219_s8 = inlined_call_operand.vmem [shape: f32[1,128], index: 8, kind: input, shape index: {}]   ;;  %s4220_s9 = inlined_call_operand.hbm [shape: f32[16,128], index: 9, kind: output, shape index: {}]  }
   0x1   :  { %16 = vsyncpa [#allocation4 + $0x1], 0  ;;  %s3239_s30 = smov 0   ;;  %s3241_s10 = smov 0  }
   0x2   :  { %s3243_s11 = smov 0   ;;  %s3245_s12 = smov 0  }
   0x3 LB: > { %s3260_s13 = sadd.s32 4294967295, %s3180_s12   ;;  %s2533_s14 = sadd.s32 4294967294, %s3180_s12   ;;  %s3180_s12 = sphi %s3245_s12, %s4278_s12   ;;  %s3176_s11 = sphi %s3243_s11, %s4277_s11   ;;  %s3172_s10 = sphi %s3241_s10, %s4276_s10   ;;  %s3168_s30 = sphi %s3239_s30, %s4275_s30  }
   0x4   : > { %s3264_s15 = sadd.s32 1, %s3180_s12   ;;  %s223_s16 = sadd.s32 1, %s3176_s11 }
   0x5   : > { %s220_s17 = ssub.s32 %s3180_s12, %s3264_s15  ;;  %p233_p0 = scmp.ne.s32.totalorder %s3176_s11, %s3172_s10 }
   0x6   : > { %p221_p1 = scmp.eq.s32.totalorder %s220_s17, 0  ;;  %p234_p2 = scmp.eq.s32.totalorder %s3260_s13, 1 }
   0x7   : > { %p239_p3 = scmp.ne.s32.totalorder %s3172_s10, %s3168_s30  ;;  %p240_p4 = scmp.eq.s32.totalorder %s2533_s14, 1 }
   0x8   : > { %s3275_s18 = scalar_select %p221_p1, %s3176_s11, %s223_s16  }
   0x9   : > { %p3277_p5 = por %p234_p2, %p233_p0  ;;  %p3281_p6 = por %p240_p4, %p239_p3 }
   0xa   : > { %p2536_p7 = scmp.ge.s32.totalorder %s3180_s12, 1  ;;  %p291_p8 = scmp.lt.s32.totalorder %s3180_s12, 3 }
   0xc   : > { %p292_p9 = pnand %p2536_p7, %p291_p8 }
   0xd   : > { %v3055_v0 = vld [vmem:[%s4212_s1] sm:$0xff] (!%p292_p9)   ;;  %s2538_s23 = sshll.u32 (!%p292_p9), %s3260_s13, 3  ;;  %vm377_vm0 = vcmask (!%p292_p9), 130048   ;;  %v3182_v6 = vmov (!%p292_p9), 0   ;;  %v3061_v7 = vld [vmem:[%s4214_s3 + $0x8] sm:$0xff] (!%p292_p9)   ;;  %v3062_v8 = vld [vmem:[%s4214_s3 + $0x10] sm:$0xff] (!%p292_p9)   ;;  %v455_v14 = vlaneseq (!%p292_p9) }
   0xe   : > { %295 = sbr.rel (%p292_p9) target bundleno = 3088 (0xc10), region = 56  ;;  %p328_p10 = scmp.lt.s32.totalorder (!%p292_p9), %s2538_s23, 15  ;;  %2744 = vmatprep.subr.bf16.mxu0 (!%p292_p9), %v3055_v0  ;;  %v3060_v5 = vld [vmem:[%s4214_s3] sm:$0xff] (!%p292_p9)   ;;  %902 = vmatprep.subr.bf16.mxu1 (!%p292_p9), %v3182_v6  ;;  %v3063_v9 = vld [vmem:[%s4214_s3 + $0x18] sm:$0xff] (!%p292_p9)   ;;  %v3065_v11 = vld [vmem:[%s4214_s3 + $0x28] sm:$0xff] (!%p292_p9)   ;;  %vm600_vm1 = vcmask (!%p292_p9), 261120  }
   0xf   : > { %2745 = vmatpush3.bf16.msra.mxu0 (!%p292_p9), %v3055_v0  ;;  %903 = vmatpush1.bf16.msra.mxu1 (!%p292_p9), %v3060_v5  ;;  %v3064_v10 = vld [vmem:[%s4214_s3 + $0x20] sm:$0xff] (!%p292_p9)   ;;  %v3066_v12 = vld [vmem:[%s4214_s3 + $0x30] sm:$0xff] (!%p292_p9)   ;;  %v3067_v13 = vld [vmem:[%s4214_s3 + $0x38] sm:$0xff] (!%p292_p9)   ;;  %v3331_v17 = vshrl.u32 (!%p292_p9), %v455_v14, 7  ;;  %s3183_s26 = smov (!%p292_p9), 32   ;;  %s3185_s28 = smov (!%p292_p9), 64  }
  0x10   : > { %1274 = vmatprep.subr.bf16.mxu0 (!%p292_p9), %v3182_v6  ;;  %904 = vmatprep.subr.bf16.mxu1 (!%p292_p9), %v3182_v6  ;;  %v2540_v15 = vld [vmem:[%s4213_s2] ss:$0 sm:$0xff] (!%p292_p9)  ;;  %v3069_v49 = vld [vmem:[%s4214_s3 + $0x48] sm:$0xff] (!%p292_p9)   ;;  %s324_s21 = sand.u32 (!%p292_p9), 1, %s3172_s10   ;;  %s2713_s25 = sshll.u32 (!%p292_p9), %s3260_s13, 7 }
  0x11   : > { %v3344_v27 = vadd.s32 (!%p292_p9), 24, %v3331_v17  ;;  %v3351_v29 = vadd.s32 (!%p292_p9), 8, %v3331_v17  ;;  %v3358_v31 = vadd.s32 (!%p292_p9), 16, %v3331_v17  ;;  %v3367_v33 = vand.u32 (!%p292_p9), 7, %v3331_v17  ;;  %v3068_v35 = vld [vmem:[%s4214_s3 + $0x40] sm:$0xff] (!%p292_p9)   ;;  %s2537_s22 = sshll.u32 (!%p292_p9), %s324_s21, 3  ;;  %s4169_s16 = scalar_lea.hbm (!%p292_p9), %s4220_s9, %s2713_s25 }
  0x12   : > { %v460_v55 = vadd.s32 (!%p292_p9), 32, %v3331_v17  ;;  %v461_v56 = vadd.s32 (!%p292_p9), 40, %v3331_v17  ;;  %s326_s29 = scalar_lea.vmem (!%p292_p9), [#allocation3], %s2537_s22  ;;  %s3188_s17 = smov (!%p292_p9), [#allocation3]  }
  0x13   : > { %905 = vmatpush1.bf16.msra.mxu1 (!%p292_p9), %v3061_v7  ;;  %v3370_v34 = vand.u32 (!%p292_p9), 7, %v3344_v27  ;;  %v3378_v38 = vand.u32 (!%p292_p9), 7, %v3351_v29  ;;  %v3383_v41 = vand.u32 (!%p292_p9), 7, %v3358_v31  ;;  %vm568_vm2 = vcmp.ge.s32.totalorder (!%p292_p9), %v3367_v33, 1  ;;  %s3122_s22 = sshll.u32 (!%p292_p9), %s3188_s17, 4  ;;  %s3123_s22 = int_to_ptr.vmem [resolvable:$false] %s3122_s22 }
  0x14   : > { %906 = vmatprep.subr.bf16.mxu1 (!%p292_p9), %v3182_v6  ;;  %vm584_vm4 = vcmp.lt.s32.totalorder (!%p292_p9), %v3367_v33, 6  ;;  %vm576_vm5 = vcmp.lt.s32.totalorder (!%p292_p9), %v3367_v33, 7 }
  0x15   : > { %s4280_s23 = smov (!%p328_p10, %s2538_s23), 15  ;;  %vm4231_vm3 = vcmp.ge.s32.totalorder %v3370_v34, 1  ;;  %vm569_vm6 = vcmp.ge.s32.totalorder %v3378_v38, 1  ;;  %vm585_vm7 = vcmp.lt.s32.totalorder %v3378_v38, 6  ;;  %vm577_vm8 = vcmp.lt.s32.totalorder %v3378_v38, 7 }
  0x16   : > { %s2539_s24 = sshll.u32 %s4280_s23, 2  ;;  %vm4232_vm9 = vcmp.ge.s32.totalorder %v3383_v41, 1  ;;  %vm4221_vm10 = vcmp.lt.s32.totalorder %v3370_v34, 7  ;;  %vm4230_vm11 = vcmp.lt.s32.totalorder %v3383_v41, 7  ;;  %s3124_s23 = scalar_lea.vmem %s3123_s22, 256 }
  0x17   : > { %s331_s27 = scalar_lea.vmem %s4211_s0, %s2539_s24  ;;  %907 = vmatpush1.bf16.msra.mxu1 %v3062_v8  ;;  %v3437_v8 = vand.u32 7, %v461_v56 }
  0x18   : > { %v3056_v1 = vld [vmem:[%s331_s27] sm:$0xff]   ;;  %v3057_v2 = vld [vmem:[%s331_s27 + $0x8] sm:$0xff]   ;;  %v3058_v3 = vld [vmem:[%s331_s27 + $0x10] sm:$0xff]   ;;  %908 = vmatprep.subr.bf16.mxu1 %v3182_v6 }
  0x19   : > { %2746 = vmatprep.mubr.msk.bf16.mxu0 %vm377_vm0, %v3056_v1  ;;  %v3059_v4 = vld [vmem:[%s331_s27 + $0x18] sm:$0xff]   ;;  %s3184_s27 = smov 96   ;;  %vm4222_vm12 = vcmp.ge.s32.totalorder %v3437_v8, 1  ;;  %vm4228_vm15 = vcmp.lt.s32.totalorder %v3437_v8, 7 }
  0x1a   : > { %2747 = vmatmul.mubr.msk.bf16.vlgmr.msra.gmra.mrb[0].mxu0 %vm377_vm0, %v3057_v2 }
  0x1b   : > { %2750 = vmatprep.mubr.msk.bf16.mxu0 %vm377_vm0, %v3058_v3  ;;  %909 = vmatpush1.bf16.msra.mxu1 %v3063_v9  ;;  %v462_v9 = vadd.s32 48, %v3331_v17 }
  0x1c   : > { %910 = vmatprep.subr.bf16.mxu1 %v3182_v6 }
  0x1f   : > { %911 = vmatpush1.bf16.msra.mxu1 %v3064_v10  ;;  %v463_v10 = vadd.s32 56, %v3331_v17 }
  0x20   : > { %912 = vmatprep.subr.bf16.mxu1 %v3182_v6 }
  0x22   : > { %2751 = vmatmul.mubr.msk.bf16.gmra.mrb[4].mxu0 %vm377_vm0, %v3059_v4 }
  0x23   : > { %913 = vmatpush1.bf16.msra.mxu1 %v3065_v11 }
  0x24   : > { %914 = vmatprep.subr.bf16.mxu1 %v3182_v6 }
  0x27   : > { %915 = vmatpush1.bf16.msra.mxu1 %v3066_v12 }
  0x28   : > { %916 = vmatprep.subr.bf16.mxu1 %v3182_v6 }
  0x2b   : > { %917 = vmatpush1.bf16.msra.mxu1 %v3067_v13  ;;  %v3448_v13 = vand.u32 7, %v460_v55 }
  0x2c   : > { %918 = vmatprep.subr.bf16.mxu1 %v3182_v6 }
  0x2d   : > { %vm4223_vm13 = vcmp.ge.s32.totalorder %v3448_v13, 1  ;;  %vm4229_vm14 = vcmp.lt.s32.totalorder %v3448_v13, 7 }
  0x2f   : > { %919 = vmatpush1.bf16.msra.mxu1 %v3068_v35 }
  0x30   : > { %920 = vmatprep.subr.bf16.mxu1 %v3182_v6 }
  0x33   : > { %921 = vmatpush1.bf16.msra.mxu1 %v3069_v49 }
  0x34   : > { %1637 = vmatprep.subr.bf16.mxu1 %v3182_v6 }
  0xed   : > { %v2748_v16 = vpop.f32.mrb[0].mxu0 }
  0xee   : > { %v3333_v18 = vadd.f32 %v2748_v16, %v2540_v15  ;;  %v424_v19 = vpop.f32.mrb[1].mxu0 }
  0xef   : > { %v3335_v20 = vadd.f32 %v2540_v15, %v424_v19  ;;  %v2749_v21 = vpop.f32.mrb[2].mxu0 }
  0xf0   : > { %v594_v22 = vmax.f32 %v3333_v18, 0.0  ;;  %v3338_v23 = vadd.f32 %v2749_v21, %v2540_v15  ;;  %v427_v24 = vpop.f32.mrb[3].mxu0  ;;  %v3456_v21 = vand.u32 7, %v462_v9 }
  0xf1   : > { %v592_v25 = vmax.f32 %v3335_v20, 0.0  ;;  %v3341_v26 = vadd.f32 %v2540_v15, %v427_v24  ;;  %v3458_v24 = vand.u32 7, %v463_v10 }
  0xf2   : > { %603 = vst.msk [vmem:[#allocation2 + $0x12] sm:$0xff] %vm600_vm1, %v594_v22  ;;  %v595_v28 = vmax.f32 %v3338_v23, 0.0  ;;  %vm4227_vm0 = vcmp.ge.s32.totalorder %v3456_v21, 1 }
  0xf3   : > { %601 = vst.msk [vmem:[#allocation2 + $0x2] sm:$0xff] %vm600_vm1, %v592_v25  ;;  %v593_v30 = vmax.f32 %v3341_v26, 0.0 }
  0xf4   : > { %604 = vst.msk [vmem:[#allocation2 + $0x1a] sm:$0xff] %vm600_vm1, %v595_v28 }
  0xf5   : > { %602 = vst.msk [vmem:[#allocation2 + $0xa] sm:$0xff] %vm600_vm1, %v593_v30  ;;  %v2752_v32 = vpop.f32.mrb[4].mxu0  ;;  %v2860_v11 = vpack.i.bf16 %v593_v30, %v592_v25  ;;  %v2865_v30 = vpack.i.bf16 %v595_v28, %v594_v22 }
  0xf6   : > { %v3375_v36 = vadd.f32 %v2752_v32, %v2540_v15  ;;  %v440_v37 = vpop.f32.mrb[5].mxu0 }
  0xf7   : > { %v3380_v39 = vadd.f32 %v2540_v15, %v440_v37  ;;  %v2753_v40 = vpop.f32.mrb[6].mxu0 }
  0xf8   : > { %v598_v42 = vmax.f32 %v3375_v36, 0.0  ;;  %v3386_v43 = vadd.f32 %v2753_v40, %v2540_v15  ;;  %v443_v44 = vpop.f32.mrb[7].mxu0 }
  0xf9   : > { %v596_v45 = vmax.f32 %v3380_v39, 0.0  ;;  %v3390_v46 = vadd.f32 %v2540_v15, %v443_v44 }
  0xfa   : > { %v625_v47 = vld [vmem:[#allocation2 + $0x1] sm:$0xff]  ;;  %607 = vst.msk [vmem:[#allocation2 + $0x32] sm:$0xff] %vm600_vm1, %v598_v42  ;;  %v599_v48 = vmax.f32 %v3386_v43, 0.0 }
  0xfb   : > { %605 = vst.msk [vmem:[#allocation2 + $0x22] sm:$0xff] %vm600_vm1, %v596_v45  ;;  %v597_v50 = vmax.f32 %v3390_v46, 0.0  ;;  %v628_v51 = vld [vmem:[#allocation2 + $0x19] sm:$0xff]  ;;  %v633_v61 = vsel %vm568_vm2, %v625_v47, 0.0 }
  0xfc   : > { %v626_v52 = vld [vmem:[#allocation2 + $0x9] sm:$0xff]  ;;  %v627_v53 = vld [vmem:[#allocation2 + $0x11] sm:$0xff]  ;;  %608 = vst.msk [vmem:[#allocation2 + $0x3a] sm:$0xff] %vm600_vm1, %v599_v48  ;;  %v636_v7 = vsel %vm4231_vm3, %v628_v51, 0.0  ;;  %vm4237_vm3 = vcmp.lt.s32.totalorder %v3448_v13, 6 }
  0xfd   : > { %v641_v54 = vld [vmem:[#allocation2 + $0x3] sm:$0xff]  ;;  %v642_v57 = vld [vmem:[#allocation2 + $0xb] sm:$0xff]  ;;  %606 = vst.msk [vmem:[#allocation2 + $0x2a] sm:$0xff] %vm600_vm1, %v597_v50  ;;  %v634_v62 = vsel %vm569_vm6, %v626_v52, 0.0  ;;  %v635_v5 = vsel %vm4232_vm9, %v627_v53, 0.0  ;;  %v643_v15 = vld [vmem:[#allocation2 + $0x13] sm:$0xff]  ;;  %v2885_v51 = vpack.i.bf16 %v597_v50, %v596_v45 }
  0xfe   : > { %v657_v58 = vld [vmem:[#allocation2 + $0x4] sm:$0xff]  ;;  %v658_v59 = vld [vmem:[#allocation2 + $0xc] sm:$0xff]  ;;  %v649_v60 = vsel %vm576_vm5, %v641_v54, 0.0  ;;  %v650_v1 = vsel %vm577_vm8, %v642_v57, 0.0  ;;  %v2855_v2 = vpack.i.bf16 %v634_v62, %v633_v61  ;;  %v2875_v14 = vpack.i.bf16 %v636_v7, %v635_v5 }
  0xff   : > { %v665_v63 = vsel %vm584_vm4, %v657_v58, 0.0  ;;  %v666_v0 = vsel %vm585_vm7, %v658_v59, 0.0  ;;  %v2870_v4 = vpack.i.bf16 %v650_v1, %v649_v60  ;;  %v651_v25 = vsel %vm4230_vm11, %v643_v15, 0.0  ;;  %v610_v1 = vld [vmem:[#allocation2 + $0x8] sm:$0xff] }
 0x100   : > { %v816_v3 = vpack.c.bf16 %v666_v0, %v665_v63  ;;  %2856 = vrot.lane.b32.xlu0 %v2855_v2, %s3183_s26  ;;  %v2900_v60 = vpack.i.bf16 %v599_v48, %v598_v42  ;;  %v609_v0 = vld [vmem:[#allocation2] sm:$0xff]  ;;  %vm4236_vm11 = vcmp.lt.s32.totalorder %v3383_v41, 6  ;;  %v659_v42 = vld [vmem:[#allocation2 + $0x14] sm:$0xff]  ;;  %vm786_vm9 = vcmask 785408  }
 0x101   : > { %2871 = vrot.lane.b32.xlu1 %v2870_v4, %s3184_s27 }
 0x102   : > { %2561 = vmatprep.mubr.msk.bf16.mxu1 %vm600_vm1, %v816_v3  ;;  %v644_v12 = vld [vmem:[#allocation2 + $0x1b] sm:$0xff] }
 0x103   : > { %v652_v16 = vsel %vm4221_vm10, %v644_v12, 0.0  ;;  %v629_v32 = vld [vmem:[#allocation2 + $0x21] sm:$0xff]  ;;  %vm4224_vm10 = vcmp.ge.s32.totalorder %v3458_v24, 1  ;;  %v632_v47 = vld [vmem:[#allocation2 + $0x39] sm:$0xff]  ;;  %v611_v12 = vld [vmem:[#allocation2 + $0x10] sm:$0xff] }
 0x104   : > { %2861 = vrot.lane.b32.xlu0 %v2860_v11, %s3185_s28  ;;  %v630_v19 = vld [vmem:[#allocation2 + $0x29] sm:$0xff]  ;;  %v2880_v35 = vpack.i.bf16 %v652_v16, %v651_v25  ;;  %v637_v22 = vsel %vm4223_vm13, %v629_v32, 0.0  ;;  %v631_v28 = vld [vmem:[#allocation2 + $0x31] sm:$0xff]  ;;  %v640_v55 = vsel %vm4224_vm10, %v632_v47, 0.0  ;;  %vm4226_vm13 = vcmp.lt.s32.totalorder %v3458_v24, 7  ;;  %v648_v50 = vld [vmem:[#allocation2 + $0x3b] sm:$0xff] }
 0x105   : > { %2876 = vrot.lane.b32.xlu1 %v2875_v14, %s3183_s26  ;;  %v638_v37 = vsel %vm4222_vm12, %v630_v19, 0.0  ;;  %v645_v40 = vld [vmem:[#allocation2 + $0x23] sm:$0xff]  ;;  %v646_v44 = vld [vmem:[#allocation2 + $0x2b] sm:$0xff]  ;;  %v639_v54 = vsel %vm4227_vm0, %v631_v28, 0.0  ;;  %vm4225_vm12 = vcmp.lt.s32.totalorder %v3456_v21, 7  ;;  %v647_v45 = vld [vmem:[#allocation2 + $0x33] sm:$0xff] }
 0x106   : > { %v2890_v49 = vpack.i.bf16 %v638_v37, %v637_v22  ;;  %v653_v52 = vsel %vm4229_vm14, %v645_v40, 0.0  ;;  %v654_v53 = vsel %vm4228_vm15, %v646_v44, 0.0  ;;  %v2905_v57 = vpack.i.bf16 %v640_v55, %v639_v54  ;;  %v660_v2 = vld [vmem:[#allocation2 + $0x1c] sm:$0xff] }
 0x107   : > { %v2895_v56 = vpack.i.bf16 %v654_v53, %v653_v52  ;;  %v655_v58 = vsel %vm4225_vm12, %v647_v45, 0.0  ;;  %v656_v59 = vsel %vm4226_vm13, %v648_v50, 0.0  ;;  %vm560_vm10 = vcmp.ge.s32.totalorder %v3367_v33, 2  ;;  %v612_v14 = vld [vmem:[#allocation2 + $0x18] sm:$0xff] }
 0x108   : > { %2866 = vrot.lane.b32.xlu0 %v2865_v30, %s3185_s28  ;;  %v2910_v61 = vpack.i.bf16 %v656_v59, %v655_v58  ;;  %vm561_vm12 = vcmp.ge.s32.totalorder %v3378_v38, 2  ;;  %vm4233_vm13 = vcmp.lt.s32.totalorder %v3370_v34, 6  ;;  %vm4235_vm0 = vcmp.ge.s32.totalorder %v3383_v41, 2  ;;  %v661_v59 = vld [vmem:[#allocation2 + $0x24] sm:$0xff] }
 0x109   : > { %2881 = vrot.lane.b32.xlu1 %v2880_v35, %s3184_s27  ;;  %vm4234_vm15 = vcmp.ge.s32.totalorder %v3370_v34, 2  ;;  %vm777_vm14 = vcmask 523264   ;;  %v617_v48 = vsel %vm560_vm10, %v609_v0, 0.0  ;;  %v618_v5 = vsel %vm561_vm12, %v610_v1, 0.0  ;;  %v613_v1 = vld [vmem:[#allocation2 + $0x20] sm:$0xff] }
 0x10a   : > { %v668_v9 = vsel %vm4233_vm13, %v660_v2, 0.0  ;;  %v667_v44 = vsel %vm4236_vm11, %v659_v42, 0.0  ;;  %vm589_vm13 = vcmp.lt.s32.totalorder %v3437_v8, 6  ;;  %v619_v22 = vsel %vm4235_vm0, %v611_v12, 0.0  ;;  %v614_v2 = vld [vmem:[#allocation2 + $0x28] sm:$0xff] }
 0x10b   : > { %v620_v28 = vsel %vm4234_vm15, %v612_v14, 0.0  ;;  %v818_v45 = vpack.c.bf16 %v668_v9, %v667_v44  ;;  %vm4239_vm15 = vcmp.ge.s32.totalorder %v3448_v13, 2  ;;  %vm4238_vm0 = vcmp.ge.s32.totalorder %v3437_v8, 2 }
 0x10c   : > { %2891 = vrot.lane.b32.xlu0 %v2890_v49, %s3183_s26  ;;  %v621_v9 = vsel %vm4239_vm15, %v613_v1, 0.0  ;;  %vm590_vm11 = vcmp.lt.s32.totalorder %v3456_v21, 6  ;;  %vm567_vm15 = vcmp.ge.s32.totalorder %v3458_v24, 2 }
 0x10d   : > { %2886 = vrot.lane.b32.xlu1 %v2885_v51, %s3185_s28 }
 0x110   : > { %2896 = vrot.lane.b32.xlu0 %v2895_v56, %s3184_s27 }
 0x111   : > { %2906 = vrot.lane.b32.xlu1 %v2905_v57, %s3183_s26 }
 0x114   : > { %2901 = vrot.lane.b32.xlu0 %v2900_v60, %s3185_s28  ;;  %v662_v60 = vld [vmem:[#allocation2 + $0x2c] sm:$0xff] }
 0x115   : > { %2911 = vrot.lane.b32.xlu1 %v2910_v61, %s3184_s27 }
 0x172   : > { %v2857_v62 = vpop.permute.xlu0 %2856 }
 0x173   : > { %v2872_v63 = vpop.permute.xlu1 %2871  ;;  %v2859_v3 = vunpack.i.h.bf16 %v2857_v62  ;;  %v2858_v4 = vunpack.i.l.bf16 %v2857_v62 }
 0x174   : > { %v2874_v10 = vunpack.i.h.bf16 %v2872_v63  ;;  %v2873_v11 = vunpack.i.l.bf16 %v2872_v63 }
 0x175   : > { %v769_v25 = vsel %vm600_vm1, %v617_v48, %v2858_v4  ;;  %v770_v30 = vsel %vm600_vm1, %v618_v5, %v2859_v3  ;;  %v669_v3 = vsel %vm4237_vm3, %v661_v59, 0.0  ;;  %v670_v4 = vsel %vm589_vm13, %v662_v60, 0.0 }
 0x176   : > { %v2862_v7 = vpop.permute.xlu0 %2861  ;;  %vm591_vm3 = vcmp.lt.s32.totalorder %v3458_v24, 6 }
 0x177   : > { %v2877_v15 = vpop.permute.xlu1 %2876  ;;  %v2864_v16 = vunpack.i.h.bf16 %v2862_v7  ;;  %v2863_v19 = vunpack.i.l.bf16 %v2862_v7 }
 0x178   : > { %v2879_v32 = vunpack.i.h.bf16 %v2877_v15  ;;  %v2878_v35 = vunpack.i.l.bf16 %v2877_v15 }
 0x179   : > { %v778_v37 = vsel %vm777_vm14, %v769_v25, %v2863_v19  ;;  %v779_v40 = vsel %vm777_vm14, %v770_v30, %v2864_v16  ;;  %v820_v19 = vpack.c.bf16 %v670_v4, %v669_v3 }
 0x17a   : > { %v2867_v47 = vpop.permute.xlu0 %2866  ;;  %v787_v49 = vsel %vm786_vm9, %v778_v37, %v2873_v11  ;;  %v788_v51 = vsel %vm786_vm9, %v779_v40, %v2874_v10  ;;  %v772_v50 = vsel %vm600_vm1, %v620_v28, %v2879_v32  ;;  %v771_v56 = vsel %vm600_vm1, %v619_v22, %v2878_v35  ;;  %v663_v37 = vld [vmem:[#allocation2 + $0x34] sm:$0xff]  ;;  %v664_v40 = vld [vmem:[#allocation2 + $0x3c] sm:$0xff] }
 0x17b   : > { %v2882_v52 = vpop.permute.xlu1 %2881  ;;  %v2869_v53 = vunpack.i.h.bf16 %v2867_v47  ;;  %v2868_v54 = vunpack.i.l.bf16 %v2867_v47  ;;  %v815_v55 = vpack.c.bf16 %v788_v51, %v787_v49  ;;  %v622_v10 = vsel %vm4238_vm0, %v614_v2, 0.0  ;;  %v615_v51 = vld [vmem:[#allocation2 + $0x30] sm:$0xff] }
 0x17c   : > { %v2884_v57 = vunpack.i.h.bf16 %v2882_v52  ;;  %v2883_v58 = vunpack.i.l.bf16 %v2882_v52  ;;  %vm566_vm0 = vcmp.ge.s32.totalorder %v3456_v21, 2  ;;  %v671_v47 = vsel %vm590_vm11, %v663_v37, 0.0  ;;  %v616_v52 = vld [vmem:[#allocation2 + $0x38] sm:$0xff] }
 0x17d   : > { %v781_v61 = vsel %vm777_vm14, %v772_v50, %v2869_v53  ;;  %v780_v62 = vsel %vm777_vm14, %v771_v56, %v2868_v54  ;;  %935 = vmatmul.mubr.bf16.vlgmr.msra.gmra.mrb[0].mxu1 %v815_v55  ;;  %v672_v49 = vsel %vm591_vm3, %v664_v40, 0.0  ;;  %v624_v59 = vsel %vm567_vm15, %v616_v52, 0.0 }
 0x17e   : > { %v2892_v63 = vpop.permute.xlu0 %2891  ;;  %2562 = vmatprep.mubr.msk.bf16.mxu1 %vm600_vm1, %v818_v45  ;;  %v789_v5 = vsel %vm786_vm9, %v780_v62, %v2883_v58  ;;  %v790_v7 = vsel %vm786_vm9, %v781_v61, %v2884_v57  ;;  %v623_v58 = vsel %vm566_vm0, %v615_v51, 0.0  ;;  %v822_v61 = vpack.c.bf16 %v672_v49, %v671_v47  ;;  %v3078_v51 = vld [vmem:[%s4216_s5 + $0x40] sm:$0xff]  }
 0x17f   : > { %v2887_v0 = vpop.permute.xlu1 %2886  ;;  %v2894_v42 = vunpack.i.h.bf16 %v2892_v63  ;;  %v2893_v48 = vunpack.i.l.bf16 %v2892_v63  ;;  %v817_v16 = vpack.c.bf16 %v790_v7, %v789_v5  ;;  %v3070_v5 = vld [vmem:[%s4216_s5] sm:$0xff]   ;;  %v3071_v7 = vld [vmem:[%s4216_s5 + $0x8] sm:$0xff]  }
 0x180   : > { %v2889_v12 = vunpack.i.h.bf16 %v2887_v0  ;;  %v2888_v14 = vunpack.i.l.bf16 %v2887_v0  ;;  %1275 = vmatpush1.bf16.msra.mxu0 %v3070_v5 }
 0x181   : > { %v774_v25 = vsel %vm600_vm1, %v622_v10, %v2894_v42  ;;  %v773_v30 = vsel %vm600_vm1, %v621_v9, %v2893_v48  ;;  %1276 = vmatprep.subr.bf16.mxu0 %v3182_v6  ;;  %v3072_v9 = vld [vmem:[%s4216_s5 + $0x10] sm:$0xff]   ;;  %v3073_v10 = vld [vmem:[%s4216_s5 + $0x18] sm:$0xff]  }
 0x182   : > { %v2897_v11 = vpop.permute.xlu0 %2896  ;;  %v782_v22 = vsel %vm777_vm14, %v773_v30, %v2888_v14  ;;  %v783_v28 = vsel %vm777_vm14, %v774_v25, %v2889_v12  ;;  %v3075_v12 = vld [vmem:[%s4216_s5 + $0x28] sm:$0xff]   ;;  %v3600_v14 = vld [vmem:[%s4215_s4] ss:$0 sm:$0xff] }
 0x183   : > { %v2907_v15 = vpop.permute.xlu1 %2906  ;;  %v2899_v32 = vunpack.i.h.bf16 %v2897_v11  ;;  %v2898_v35 = vunpack.i.l.bf16 %v2897_v11  ;;  %v3074_v11 = vld [vmem:[%s4216_s5 + $0x20] sm:$0xff]  }
 0x184   : > { %v2909_v53 = vunpack.i.h.bf16 %v2907_v15  ;;  %v2908_v54 = vunpack.i.l.bf16 %v2907_v15  ;;  %1277 = vmatpush1.bf16.msra.mxu0 %v3071_v7  ;;  %v3076_v15 = vld [vmem:[%s4216_s5 + $0x30] sm:$0xff]  }
 0x185   : > { %943 = vmatmul.mubr.bf16.gmra.mrb[4].mxu1 %v817_v16  ;;  %v791_v55 = vsel %vm786_vm9, %v782_v22, %v2898_v35  ;;  %v792_v45 = vsel %vm786_vm9, %v783_v28, %v2899_v32  ;;  %1278 = vmatprep.subr.bf16.mxu0 %v3182_v6  ;;  %v3077_v22 = vld [vmem:[%s4216_s5 + $0x38] sm:$0xff]  }
 0x186   : > { %v2902_v44 = vpop.permute.xlu0 %2901  ;;  %2563 = vmatprep.mubr.msk.bf16.mxu1 %vm600_vm1, %v820_v19  ;;  %v819_v60 = vpack.c.bf16 %v792_v45, %v791_v55  ;;  %v776_v62 = vsel %vm600_vm1, %v624_v59, %v2909_v53  ;;  %v775_v63 = vsel %vm600_vm1, %v623_v58, %v2908_v54 }
 0x187   : > { %v2912_v50 = vpop.permute.xlu1 %2911  ;;  %v2904_v56 = vunpack.i.h.bf16 %v2902_v44  ;;  %v2903_v57 = vunpack.i.l.bf16 %v2902_v44 }
 0x188   : > { %v2914_v0 = vunpack.i.h.bf16 %v2912_v50  ;;  %v2913_v1 = vunpack.i.l.bf16 %v2912_v50  ;;  %1279 = vmatpush1.bf16.msra.mxu0 %v3072_v9 }
 0x189   : > { %v785_v2 = vsel %vm777_vm14, %v776_v62, %v2904_v56  ;;  %v784_v3 = vsel %vm777_vm14, %v775_v63, %v2903_v57  ;;  %1280 = vmatprep.subr.bf16.mxu0 %v3182_v6 }
 0x18a   : > { %v793_v4 = vsel %vm786_vm9, %v784_v3, %v2913_v1  ;;  %v794_v42 = vsel %vm786_vm9, %v785_v2, %v2914_v0 }
 0x18b   : > { %v821_v48 = vpack.c.bf16 %v794_v42, %v793_v4 }
 0x18c   : > { %1281 = vmatpush1.bf16.msra.mxu0 %v3073_v10 }
 0x18d   : > { %951 = vmatmul.mubr.bf16.gmra.mrb[8].mxu1 %v819_v60  ;;  %1282 = vmatprep.subr.bf16.mxu0 %v3182_v6  ;;  %v3079_v60 = vld [vmem:[%s4216_s5 + $0x48] sm:$0xff]  }
 0x18e   : > { %2564 = vmatprep.mubr.msk.bf16.mxu1 %vm600_vm1, %v822_v61 }
 0x190   : > { %1283 = vmatpush1.bf16.msra.mxu0 %v3074_v11 }
 0x191   : > { %1284 = vmatprep.subr.bf16.mxu0 %v3182_v6 }
 0x194   : > { %1285 = vmatpush1.bf16.msra.mxu0 %v3075_v12 }
 0x195   : > { %959 = vmatmul.mubr.bf16.gmra.mrb[12].mxu1 %v821_v48  ;;  %1286 = vmatprep.subr.bf16.mxu0 %v3182_v6 }
 0x198   : > { %1287 = vmatpush1.bf16.msra.mxu0 %v3076_v15 }
 0x199   : > { %1288 = vmatprep.subr.bf16.mxu0 %v3182_v6 }
 0x19c   : > { %1289 = vmatpush1.bf16.msra.mxu0 %v3077_v22 }
 0x19d   : > { %1290 = vmatprep.subr.bf16.mxu0 %v3182_v6 }
 0x1a0   : > { %1291 = vmatpush1.bf16.msra.mxu0 %v3078_v51 }
 0x1a1   : > { %1292 = vmatprep.subr.bf16.mxu0 %v3182_v6 }
 0x1a4   : > { %1293 = vmatpush1.bf16.msra.mxu0 %v3079_v60 }
 0x1a5   : > { %1885 = vmatprep.subr.bf16.mxu0 %v3182_v6 }
 0x250   : > { %v936_v16 = vpop.f32.mrb[0].mxu1 }
 0x251   : > { %v937_v19 = vadd.f32 %v3600_v14, %v936_v16  ;;  %v938_v25 = vpop.f32.mrb[1].mxu1 }
 0x252   : > { %v939_v30 = vpop.f32.mrb[2].mxu1 }
 0x253   : > { %v967_v32 = vmax.f32 %v937_v19, 0.0  ;;  %v940_v35 = vadd.f32 %v3600_v14, %v939_v30  ;;  %v941_v37 = vpop.f32.mrb[3].mxu1 }
 0x255   : > { %975 = vst.msk [vmem:[#allocation2 + $0x2] sm:$0xff] %vm600_vm1, %v967_v32  ;;  %v968_v40 = vmax.f32 %v940_v35, 0.0 }
 0x257   : > { %976 = vst.msk [vmem:[#allocation2 + $0xa] sm:$0xff] %vm600_vm1, %v968_v40  ;;  %v2915_v44 = vpack.i.bf16 %v968_v40, %v967_v32 }
 0x258   : > { %v944_v28 = vpop.f32.mrb[4].mxu1 }
 0x259   : > { %v945_v47 = vadd.f32 %v3600_v14, %v944_v28  ;;  %v946_v49 = vpop.f32.mrb[5].mxu1  ;;  %2916 = vrot.lane.b32.xlu1 %v2915_v44, %s3185_s28 }
 0x25a   : > { %v947_v52 = vpop.f32.mrb[6].mxu1 }
 0x25b   : > { %v969_v53 = vmax.f32 %v945_v47, 0.0  ;;  %v948_v54 = vadd.f32 %v3600_v14, %v947_v52  ;;  %v949_v55 = vpop.f32.mrb[7].mxu1 }
 0x25c   : > { %v999_v45 = vld [vmem:[#allocation2 + $0x1] sm:$0xff] }
 0x25d   : > { %977 = vst.msk [vmem:[#allocation2 + $0x12] sm:$0xff] %vm600_vm1, %v969_v53  ;;  %v970_v50 = vmax.f32 %v948_v54, 0.0  ;;  %v1007_v58 = vsel %vm568_vm2, %v999_v45, 0.0  ;;  %vm4245_vm2 = vcmp.ge.s32.totalorder %v3383_v41, 1 }
 0x25e   : > { %v1000_v56 = vld [vmem:[#allocation2 + $0x9] sm:$0xff] }
 0x25f   : > { %v2930_v57 = vpack.i.bf16 %v970_v50, %v969_v53  ;;  %978 = vst.msk [vmem:[#allocation2 + $0x1a] sm:$0xff] %vm600_vm1, %v970_v50  ;;  %v1008_v59 = vsel %vm569_vm6, %v1000_v56, 0.0  ;;  %v1031_v1 = vld [vmem:[#allocation2 + $0x4] sm:$0xff]  ;;  %vm4248_vm6 = vcmp.lt.s32.totalorder %v3370_v34, 7 }
 0x260   : > { %v952_v61 = vpop.f32.mrb[8].mxu1  ;;  %v2920_v62 = vpack.i.bf16 %v1008_v59, %v1007_v58  ;;  %v1015_v3 = vld [vmem:[#allocation2 + $0x3] sm:$0xff]  ;;  %v1039_v7 = vsel %vm584_vm4, %v1031_v1, 0.0  ;;  %vm4246_vm4 = vcmp.ge.s32.totalorder %v3370_v34, 1 }
 0x261   : > { %v953_v63 = vadd.f32 %v3600_v14, %v952_v61  ;;  %v954_v0 = vpop.f32.mrb[9].mxu1  ;;  %v1023_v15 = vsel %vm576_vm5, %v1015_v3, 0.0  ;;  %vm4247_vm5 = vcmp.lt.s32.totalorder %v3383_v41, 7 }
 0x262   : > { %v955_v2 = vpop.f32.mrb[10].mxu1  ;;  %2921 = vrot.lane.b32.xlu0 %v2920_v62, %s3183_s26 }
 0x263   : > { %v971_v4 = vmax.f32 %v953_v63, 0.0  ;;  %v956_v42 = vadd.f32 %v3600_v14, %v955_v2  ;;  %v957_v48 = vpop.f32.mrb[11].mxu1 }
 0x264   : > { %v1032_v5 = vld [vmem:[#allocation2 + $0xc] sm:$0xff] }
 0x265   : > { %v1016_v9 = vld [vmem:[#allocation2 + $0xb] sm:$0xff]  ;;  %979 = vst.msk [vmem:[#allocation2 + $0x22] sm:$0xff] %vm600_vm1, %v971_v4  ;;  %v972_v11 = vmax.f32 %v956_v42, 0.0  ;;  %v1040_v12 = vsel %vm585_vm7, %v1032_v5, 0.0  ;;  %vm4249_vm7 = vcmp.ge.s32.totalorder %v3448_v13, 1 }
 0x266   : > { %v1001_v10 = vld [vmem:[#allocation2 + $0x11] sm:$0xff]  ;;  %v1024_v16 = vsel %vm577_vm8, %v1016_v9, 0.0  ;;  %v1188_v19 = vpack.c.bf16 %v1040_v12, %v1039_v7  ;;  %v1002_v30 = vld [vmem:[#allocation2 + $0x19] sm:$0xff]  ;;  %vm4250_vm8 = vcmp.ge.s32.totalorder %v3437_v8, 1 }
 0x267   : > { %v2925_v25 = vpack.i.bf16 %v1024_v16, %v1023_v15  ;;  %v2945_v32 = vpack.i.bf16 %v972_v11, %v971_v4  ;;  %980 = vst.msk [vmem:[#allocation2 + $0x2a] sm:$0xff] %vm600_vm1, %v972_v11  ;;  %v1009_v35 = vsel %vm4245_vm2, %v1001_v10, 0.0  ;;  %v1010_v37 = vsel %vm4246_vm4, %v1002_v30, 0.0  ;;  %v1017_v49 = vld [vmem:[#allocation2 + $0x13] sm:$0xff]  ;;  %v984_v30 = vld [vmem:[#allocation2 + $0x8] sm:$0xff] }
 0x268   : > { %v960_v40 = vpop.f32.mrb[12].mxu1  ;;  %2576 = vmatprep.mubr.msk.bf16.mxu0 %vm600_vm1, %v1188_v19  ;;  %v2935_v44 = vpack.i.bf16 %v1010_v37, %v1009_v35  ;;  %v1025_v50 = vsel %vm4247_vm5, %v1017_v49, 0.0  ;;  %vm4251_vm2 = vcmp.lt.s32.totalorder %v3448_v13, 7  ;;  %vm4252_vm4 = vcmp.lt.s32.totalorder %v3437_v8, 7 }
 0x269   : > { %2926 = vrot.lane.b32.xlu0 %v2925_v25, %s3184_s27  ;;  %v961_v22 = vadd.f32 %v3600_v14, %v960_v40  ;;  %v962_v28 = vpop.f32.mrb[13].mxu1  ;;  %vm4253_vm5 = vcmp.ge.s32.totalorder %v3456_v21, 1  ;;  %v983_v25 = vld [vmem:[#allocation2] sm:$0xff]  ;;  %v992_v37 = vsel %vm561_vm12, %v984_v30, 0.0  ;;  %vm4258_vm12 = vcmp.lt.s32.totalorder %v3383_v41, 6 }
 0x26a   : > { %v963_v47 = vpop.f32.mrb[14].mxu1  ;;  %2936 = vrot.lane.b32.xlu1 %v2935_v44, %s3183_s26  ;;  %v991_v35 = vsel %vm560_vm10, %v983_v25, 0.0  ;;  %vm4257_vm10 = vcmp.lt.s32.totalorder %v3370_v34, 6 }
 0x26b   : > { %v973_v51 = vmax.f32 %v961_v22, 0.0  ;;  %v964_v52 = vadd.f32 %v3600_v14, %v963_v47  ;;  %v965_v53 = vpop.f32.mrb[15].mxu1 }
 0x26c   : > { %v1018_v54 = vld [vmem:[#allocation2 + $0x1b] sm:$0xff] }
 0x26d   : > { %2931 = vrot.lane.b32.xlu0 %v2930_v57, %s3185_s28  ;;  %v1003_v55 = vld [vmem:[#allocation2 + $0x21] sm:$0xff]  ;;  %981 = vst.msk [vmem:[#allocation2 + $0x32] sm:$0xff] %vm600_vm1, %v973_v51  ;;  %v974_v45 = vmax.f32 %v964_v52, 0.0  ;;  %v1026_v56 = vsel %vm4248_vm6, %v1018_v54, 0.0  ;;  %vm4254_vm6 = vcmp.ge.s32.totalorder %v3458_v24, 1  ;;  %v1033_v53 = vld [vmem:[#allocation2 + $0x14] sm:$0xff] }
 0x26e   : > { %v2940_v58 = vpack.i.bf16 %v1026_v56, %v1025_v50  ;;  %v1004_v59 = vld [vmem:[#allocation2 + $0x29] sm:$0xff]  ;;  %v1011_v14 = vsel %vm4249_vm7, %v1003_v55, 0.0  ;;  %vm4255_vm7 = vcmp.lt.s32.totalorder %v3456_v21, 7  ;;  %v1034_v22 = vld [vmem:[#allocation2 + $0x1c] sm:$0xff] }
 0x26f   : > { %v2960_v60 = vpack.i.bf16 %v974_v45, %v973_v51  ;;  %982 = vst.msk [vmem:[#allocation2 + $0x3a] sm:$0xff] %vm600_vm1, %v974_v45  ;;  %v1012_v57 = vsel %vm4250_vm8, %v1004_v59, 0.0  ;;  %v1019_v62 = vld [vmem:[#allocation2 + $0x23] sm:$0xff]  ;;  %vm4256_vm8 = vcmp.lt.s32.totalorder %v3458_v24, 7  ;;  %v1042_v38 = vsel %vm4257_vm10, %v1034_v22, 0.0  ;;  %v985_v56 = vld [vmem:[#allocation2 + $0x10] sm:$0xff] }
 0x270   : > { %2941 = vrot.lane.b32.xlu1 %v2940_v58, %s3184_s27  ;;  %v2950_v61 = vpack.i.bf16 %v1012_v57, %v1011_v14  ;;  %v1027_v1 = vsel %vm4251_vm2, %v1019_v62, 0.0  ;;  %v986_v58 = vld [vmem:[#allocation2 + $0x18] sm:$0xff]  ;;  %vm4259_vm2 = vcmp.ge.s32.totalorder %v3383_v41, 2 }
 0x272   : > { %2951 = vrot.lane.b32.xlu0 %v2950_v61, %s3183_s26  ;;  %v1041_v61 = vsel %vm4258_vm12, %v1033_v53, 0.0 }
 0x273   : > { %v1190_v62 = vpack.c.bf16 %v1042_v38, %v1041_v61 }
 0x274   : > { %2946 = vrot.lane.b32.xlu1 %v2945_v32, %s3185_s28  ;;  %v1020_v63 = vld [vmem:[#allocation2 + $0x2b] sm:$0xff] }
 0x275   : > { %v1005_v0 = vld [vmem:[#allocation2 + $0x31] sm:$0xff]  ;;  %v1028_v2 = vsel %vm4252_vm4, %v1020_v63, 0.0  ;;  %v993_v63 = vsel %vm4259_vm2, %v985_v56, 0.0  ;;  %vm4260_vm4 = vcmp.ge.s32.totalorder %v3370_v34, 2 }
 0x276   : > { %v2955_v3 = vpack.i.bf16 %v1028_v2, %v1027_v1  ;;  %v1006_v4 = vld [vmem:[#allocation2 + $0x39] sm:$0xff]  ;;  %v1013_v5 = vsel %vm4253_vm5, %v1005_v0, 0.0  ;;  %v994_v0 = vsel %vm4260_vm4, %v986_v58, 0.0  ;;  %vm4261_vm5 = vcmp.lt.s32.totalorder %v3448_v13, 6  ;;  %v989_v38 = vld [vmem:[#allocation2 + $0x30] sm:$0xff] }
 0x277   : > { %v1021_v42 = vld [vmem:[#allocation2 + $0x33] sm:$0xff]  ;;  %v1022_v48 = vld [vmem:[#allocation2 + $0x3b] sm:$0xff]  ;;  %v1014_v7 = vsel %vm4254_vm6, %v1006_v4, 0.0  ;;  %vm4262_vm6 = vcmp.ge.s32.totalorder %v3448_v13, 2  ;;  %v997_v61 = vsel %vm566_vm0, %v989_v38, 0.0 }
 0x278   : > { %2956 = vrot.lane.b32.xlu0 %v2955_v3, %s3184_s27  ;;  %v2965_v9 = vpack.i.bf16 %v1014_v7, %v1013_v5  ;;  %v1029_v10 = vsel %vm4255_vm7, %v1021_v42, 0.0  ;;  %v1030_v11 = vsel %vm4256_vm8, %v1022_v48, 0.0  ;;  %v1036_v42 = vld [vmem:[#allocation2 + $0x2c] sm:$0xff]  ;;  %vm4263_vm7 = vcmp.ge.s32.totalorder %v3437_v8, 2  ;;  %v990_v13 = vld [vmem:[#allocation2 + $0x38] sm:$0xff] }
 0x279   : > { %v2970_v12 = vpack.i.bf16 %v1030_v11, %v1029_v10  ;;  %v1044_v11 = vsel %vm589_vm13, %v1036_v42, 0.0 }
 0x27a   : > { %2966 = vrot.lane.b32.xlu1 %v2965_v9, %s3183_s26  ;;  %v1035_v9 = vld [vmem:[#allocation2 + $0x24] sm:$0xff] }
 0x27c   : > { %2961 = vrot.lane.b32.xlu0 %v2960_v60, %s3185_s28 }
 0x27e   : > { %2971 = vrot.lane.b32.xlu1 %v2970_v12, %s3184_s27  ;;  %v987_v12 = vld [vmem:[#allocation2 + $0x20] sm:$0xff] }
 0x2cb   : > { %v2917_v32 = vpop.permute.xlu1 %2916 }
 0x2cc   : > { %v2919_v28 = vunpack.i.h.bf16 %v2917_v32  ;;  %v2918_v47 = vunpack.i.l.bf16 %v2917_v32 }
 0x2d4   : > { %v2922_v15 = vpop.permute.xlu0 %2921 }
 0x2d5   : > { %v2924_v16 = vunpack.i.h.bf16 %v2922_v15  ;;  %v2923_v19 = vunpack.i.l.bf16 %v2922_v15  ;;  %v988_v15 = vld [vmem:[#allocation2 + $0x28] sm:$0xff] }
 0x2d6   : > { %v996_v22 = vsel %vm4263_vm7, %v988_v15, 0.0  ;;  %v3083_v15 = vld [vmem:[%s4214_s3 + $0x68] sm:$0xff]  }
 0x2d7   : > { %v1143_v40 = vsel %vm600_vm1, %v991_v35, %v2923_v19  ;;  %v1144_v44 = vsel %vm600_vm1, %v992_v37, %v2924_v16  ;;  %v1043_v37 = vsel %vm4261_vm5, %v1035_v9, 0.0 }
 0x2d8   : > { %v1151_v54 = vsel %vm777_vm14, %v1143_v40, %v2918_v47  ;;  %v1152_v55 = vsel %vm777_vm14, %v1144_v44, %v2919_v28  ;;  %v1192_v40 = vpack.c.bf16 %v1044_v11, %v1043_v37  ;;  %v995_v44 = vsel %vm4262_vm6, %v987_v12, 0.0  ;;  %v3081_v11 = vld [vmem:[%s4214_s3 + $0x58] sm:$0xff]   ;;  %v3082_v12 = vld [vmem:[%s4214_s3 + $0x60] sm:$0xff]  }
 0x2db   : > { %v2927_v49 = vpop.permute.xlu0 %2926 }
 0x2dc   : > { %v2929_v51 = vunpack.i.h.bf16 %v2927_v49  ;;  %v2928_v52 = vunpack.i.l.bf16 %v2927_v49  ;;  %v2937_v33 = vpop.permute.xlu1 %2936  ;;  %v1037_v49 = vld [vmem:[#allocation2 + $0x34] sm:$0xff] }
 0x2dd   : > { %v2939_v59 = vunpack.i.h.bf16 %v2937_v33  ;;  %v2938_v60 = vunpack.i.l.bf16 %v2937_v33  ;;  %v1045_v8 = vsel %vm590_vm11, %v1037_v49, 0.0 }
 0x2de   : > { %v1159_v45 = vsel %vm786_vm9, %v1151_v54, %v2928_v52  ;;  %v1160_v50 = vsel %vm786_vm9, %v1152_v55, %v2929_v51  ;;  %v1038_v51 = vld [vmem:[#allocation2 + $0x3c] sm:$0xff] }
 0x2df   : > { %v1187_v14 = vpack.c.bf16 %v1160_v50, %v1159_v45  ;;  %v2932_v57 = vpop.permute.xlu0 %2931  ;;  %v1146_v3 = vsel %vm600_vm1, %v994_v0, %v2939_v59  ;;  %v1145_v4 = vsel %vm600_vm1, %v993_v63, %v2938_v60  ;;  %v1046_v45 = vsel %vm591_vm3, %v1038_v51, 0.0 }
 0x2e0   : > { %v2934_v1 = vunpack.i.h.bf16 %v2932_v57  ;;  %v2933_v2 = vunpack.i.l.bf16 %v2932_v57 }
 0x2e1   : > { %1307 = vmatmul.mubr.bf16.vlgmr.msra.gmra.mrb[8].mxu0 %v1187_v14 }
 0x2e2   : > { %2577 = vmatprep.mubr.msk.bf16.mxu0 %vm600_vm1, %v1190_v62  ;;  %v2942_v48 = vpop.permute.xlu1 %2941  ;;  %v1154_v41 = vsel %vm777_vm14, %v1146_v3, %v2934_v1  ;;  %v1153_v10 = vsel %vm777_vm14, %v1145_v4, %v2933_v2  ;;  %v998_v62 = vsel %vm567_vm15, %v990_v13, 0.0  ;;  %v1194_v1 = vpack.c.bf16 %v1046_v45, %v1045_v8  ;;  %v3085_v13 = vld [vmem:[%s4214_s3 + $0x78] sm:$0xff]  }
 0x2e3   : > { %v2944_v5 = vunpack.i.h.bf16 %v2942_v48  ;;  %v2943_v7 = vunpack.i.l.bf16 %v2942_v48 }
 0x2e4   : > { %v2952_v34 = vpop.permute.xlu0 %2951 }
 0x2e5   : > { %v2954_v16 = vunpack.i.h.bf16 %v2952_v34  ;;  %v2953_v19 = vunpack.i.l.bf16 %v2952_v34  ;;  %v1161_v25 = vsel %vm786_vm9, %v1153_v10, %v2943_v7  ;;  %v1162_v30 = vsel %vm786_vm9, %v1154_v41, %v2944_v5  ;;  %v3080_v34 = vld [vmem:[%s4214_s3 + $0x50] sm:$0xff]  }
 0x2e6   : > { %v2947_v32 = vpop.permute.xlu1 %2946  ;;  %v1189_v35 = vpack.c.bf16 %v1162_v30, %v1161_v25  ;;  %1638 = vmatpush1.bf16.msra.mxu1 %v3080_v34 }
 0x2e7   : > { %v2949_v28 = vunpack.i.h.bf16 %v2947_v32  ;;  %v2948_v47 = vunpack.i.l.bf16 %v2947_v32  ;;  %v1148_v52 = vsel %vm600_vm1, %v996_v22, %v2954_v16  ;;  %v1147_v53 = vsel %vm600_vm1, %v995_v44, %v2953_v19  ;;  %1639 = vmatprep.subr.bf16.mxu1 %v3182_v6  ;;  %v3084_v16 = vld [vmem:[%s4214_s3 + $0x70] sm:$0xff]   ;;  %v2565_v19 = vld [vmem:[%s4217_s6] ss:$0 sm:$0xff] }
 0x2e9   : > { %1315 = vmatmul.mubr.bf16.gmra.mrb[12].mxu0 %v1189_v35  ;;  %v1155_v50 = vsel %vm777_vm14, %v1147_v53, %v2948_v47  ;;  %v1156_v56 = vsel %vm777_vm14, %v1148_v52, %v2949_v28 }
 0x2ea   : > { %2578 = vmatprep.mubr.msk.bf16.mxu0 %vm600_vm1, %v1192_v40  ;;  %v2957_v54 = vpop.permute.xlu0 %2956  ;;  %1640 = vmatpush1.bf16.msra.mxu1 %v3081_v11 }
 0x2eb   : > { %v2959_v55 = vunpack.i.h.bf16 %v2957_v54  ;;  %v2958_v33 = vunpack.i.l.bf16 %v2957_v54  ;;  %1641 = vmatprep.subr.bf16.mxu1 %v3182_v6 }
 0x2ec   : > { %v2967_v58 = vpop.permute.xlu1 %2966 }
 0x2ed   : > { %v2969_v59 = vunpack.i.h.bf16 %v2967_v58  ;;  %v2968_v60 = vunpack.i.l.bf16 %v2967_v58  ;;  %v1163_v14 = vsel %vm786_vm9, %v1155_v50, %v2958_v33  ;;  %v1164_v57 = vsel %vm786_vm9, %v1156_v56, %v2959_v55 }
 0x2ee   : > { %v2962_v63 = vpop.permute.xlu0 %2961  ;;  %v1191_v0 = vpack.c.bf16 %v1164_v57, %v1163_v14  ;;  %1642 = vmatpush1.bf16.msra.mxu1 %v3082_v12 }
 0x2ef   : > { %v1150_v2 = vsel %vm600_vm1, %v998_v62, %v2969_v59  ;;  %v1149_v3 = vsel %vm600_vm1, %v997_v61, %v2968_v60  ;;  %v2964_v4 = vunpack.i.h.bf16 %v2962_v63  ;;  %v2963_v42 = vunpack.i.l.bf16 %v2962_v63  ;;  %1643 = vmatprep.subr.bf16.mxu1 %v3182_v6 }
 0x2f0   : > { %v2972_v48 = vpop.permute.xlu1 %2971 }
 0x2f1   : > { %1323 = vmatmul.mubr.bf16.gmra.mrb[16].mxu0 %v1191_v0  ;;  %v1158_v5 = vsel %vm777_vm14, %v1150_v2, %v2964_v4  ;;  %v1157_v7 = vsel %vm777_vm14, %v1149_v3, %v2963_v42  ;;  %v2974_v21 = vunpack.i.h.bf16 %v2972_v48  ;;  %v2973_v9 = vunpack.i.l.bf16 %v2972_v48  ;;  %v3087_v42 = vld [vmem:[%s4214_s3 + $0x88] sm:$0xff]  }
 0x2f2   : > { %2579 = vmatprep.mubr.msk.bf16.mxu0 %vm600_vm1, %v1194_v1  ;;  %1644 = vmatpush1.bf16.msra.mxu1 %v3083_v15  ;;  %v3795_v48 = vand.u32 3, %v3331_v17  ;;  %v3089_v15 = vld [vmem:[%s4214_s3 + $0x98] sm:$0xff]  }
 0x2f3   : > { %v1165_v24 = vsel %vm786_vm9, %v1157_v7, %v2973_v9  ;;  %v1166_v41 = vsel %vm786_vm9, %v1158_v5, %v2974_v21  ;;  %1645 = vmatprep.subr.bf16.mxu1 %v3182_v6  ;;  %v3798_v5 = vand.u32 3, %v3351_v29 }
 0x2f4   : > { %v1193_v10 = vpack.c.bf16 %v1166_v41, %v1165_v24  ;;  %vm1426_vm3 = vcmp.ge.s32.totalorder %v3795_v48, 1  ;;  %vm1434_vm13 = vcmp.lt.s32.totalorder %v3795_v48, 2  ;;  %vm1430_vm0 = vcmp.lt.s32.totalorder %v3795_v48, 3 }
 0x2f5   : > { %vm1427_vm11 = vcmp.ge.s32.totalorder %v3798_v5, 1  ;;  %vm1435_vm15 = vcmp.lt.s32.totalorder %v3798_v5, 2  ;;  %vm1431_vm8 = vcmp.lt.s32.totalorder %v3798_v5, 3  ;;  %vm4242_vm5 = vcmp.ge.s32.totalorder %v3795_v48, 2 }
 0x2f6   : > { %1646 = vmatpush1.bf16.msra.mxu1 %v3084_v16  ;;  %vm4241_vm6 = vcmp.ge.s32.totalorder %v3798_v5, 2 }
 0x2f7   : > { %1647 = vmatprep.subr.bf16.mxu1 %v3182_v6 }
 0x2f9   : > { %1331 = vmatmul.mubr.bf16.gmra.mrb[20].mxu0 %v1193_v10 }
 0x2fa   : > { %1648 = vmatpush1.bf16.msra.mxu1 %v3085_v13 }
 0x2fb   : > { %1649 = vmatprep.subr.bf16.mxu1 %v3182_v6 }
 0x3b4   : > { %v1308_v25 = vpop.f32.mrb[8].mxu0 }
 0x3b5   : > { %v1309_v30 = vadd.f32 %v2565_v19, %v1308_v25  ;;  %v1310_v32 = vpop.f32.mrb[9].mxu0 }
 0x3b6   : > { %v1311_v35 = vpop.f32.mrb[10].mxu0 }
 0x3b7   : > { %v1339_v37 = vadd.f32 %v1309_v30, %v3335_v20  ;;  %v1312_v40 = vadd.f32 %v2565_v19, %v1311_v35  ;;  %v1313_v44 = vpop.f32.mrb[11].mxu0 }
 0x3b9   : > { %1347 = vst.msk [vmem:[#allocation2] sm:$0xff] %vm600_vm1, %v1339_v37  ;;  %v1340_v22 = vadd.f32 %v1312_v40, %v3341_v26 }
 0x3bb   : > { %1348 = vst.msk [vmem:[#allocation2 + $0x8] sm:$0xff] %vm600_vm1, %v1340_v22 }
 0x3bc   : > { %v1316_v28 = vpop.f32.mrb[12].mxu0 }
 0x3bd   : > { %v1317_v47 = vadd.f32 %v2565_v19, %v1316_v28  ;;  %v1318_v49 = vpop.f32.mrb[13].mxu0 }
 0x3be   : > { %v1319_v51 = vpop.f32.mrb[14].mxu0 }
 0x3bf   : > { %v1341_v52 = vadd.f32 %v1317_v47, %v3333_v18  ;;  %v1320_v53 = vadd.f32 %v2565_v19, %v1319_v51  ;;  %v1321_v54 = vpop.f32.mrb[15].mxu0 }
 0x3c1   : > { %1349 = vst.msk [vmem:[#allocation2 + $0x10] sm:$0xff] %vm600_vm1, %v1341_v52  ;;  %v1342_v20 = vadd.f32 %v1320_v53, %v3338_v23  ;;  %v3086_v23 = vld [vmem:[%s4214_s3 + $0x80] sm:$0xff]   ;;  %v3840_v52 = vand.u32 3, %v3358_v31  ;;  %v3843_v53 = vand.u32 3, %v3344_v27 }
 0x3c2   : > { %v1355_v55 = vld [vmem:[#allocation2] ss:$2 sm:$0xff]  ;;  %v1363_v33 = vld [vmem:[#allocation2 + $0x1] ss:$2 sm:$0xff]  ;;  %1650 = vmatpush1.bf16.msra.mxu1 %v3086_v23 }
 0x3c3   : > { %1350 = vst.msk [vmem:[#allocation2 + $0x18] sm:$0xff] %vm600_vm1, %v1342_v20  ;;  %v3770_v38 = vmax.f32 %v1355_v55, %v1363_v33  ;;  %1651 = vmatprep.subr.bf16.mxu1 %v3182_v6  ;;  %vm1428_vm10 = vcmp.ge.s32.totalorder %v3840_v52, 1  ;;  %vm1429_vm12 = vcmp.ge.s32.totalorder %v3843_v53, 1  ;;  %vm1432_vm2 = vcmp.lt.s32.totalorder %v3840_v52, 3 }
 0x3c4   : > { %v1324_v26 = vpop.f32.mrb[16].mxu0  ;;  %vm4240_vm4 = vcmp.lt.s32.totalorder %v3843_v53, 3  ;;  %vm1436_vm7 = vcmp.lt.s32.totalorder %v3840_v52, 2 }
 0x3c5   : > { %v1325_v8 = vadd.f32 %v2565_v19, %v1324_v26  ;;  %v1326_v45 = vpop.f32.mrb[17].mxu0  ;;  %v1438_v18 = vmax.f32 %v3770_v38, 0.0 }
 0x3c6   : > { %v1327_v50 = vpop.f32.mrb[18].mxu0  ;;  %1652 = vmatpush1.bf16.msra.mxu1 %v3087_v42 }
 0x3c7   : > { %v1343_v56 = vadd.f32 %v1325_v8, %v3380_v39  ;;  %v1328_v58 = vadd.f32 %v2565_v19, %v1327_v50  ;;  %v1329_v59 = vpop.f32.mrb[19].mxu0  ;;  %1442 = vst.msk [vmem:[#allocation2 + $0x2] sm:$0xff] %vm600_vm1, %v1438_v18  ;;  %1653 = vmatprep.subr.bf16.mxu1 %v3182_v6 }
 0x3c9   : > { %1351 = vst.msk [vmem:[#allocation2 + $0x20] sm:$0xff] %vm600_vm1, %v1343_v56  ;;  %v1344_v60 = vadd.f32 %v1328_v58, %v3390_v46 }
 0x3ca   : > { %v1357_v14 = vld [vmem:[#allocation2 + $0x10] ss:$2 sm:$0xff]  ;;  %v1365_v57 = vld [vmem:[#allocation2 + $0x11] ss:$2 sm:$0xff] }
 0x3cb   : > { %1352 = vst.msk [vmem:[#allocation2 + $0x28] sm:$0xff] %vm600_vm1, %v1344_v60  ;;  %v3785_v61 = vmax.f32 %v1357_v14, %v1365_v57 }
 0x3cc   : > { %v1332_v39 = vpop.f32.mrb[20].mxu0 }
 0x3cd   : > { %v1333_v62 = vadd.f32 %v2565_v19, %v1332_v39  ;;  %v1334_v63 = vpop.f32.mrb[21].mxu0  ;;  %v1439_v0 = vmax.f32 %v3785_v61, 0.0 }
 0x3ce   : > { %v1335_v1 = vpop.f32.mrb[22].mxu0  ;;  %v1446_v58 = vld [vmem:[#allocation2] sm:$0xff] }
 0x3cf   : > { %v1345_v2 = vadd.f32 %v1333_v62, %v3375_v36  ;;  %v1336_v3 = vadd.f32 %v2565_v19, %v1335_v1  ;;  %v1337_v4 = vpop.f32.mrb[23].mxu0  ;;  %v2975_v46 = vpack.i.bf16 %v1439_v0, %v1438_v18  ;;  %1443 = vst.msk [vmem:[#allocation2 + $0xa] sm:$0xff] %vm600_vm1, %v1439_v0  ;;  %v3088_v36 = vld [vmem:[%s4214_s3 + $0x90] sm:$0xff]   ;;  %v1450_v14 = vsel %vm4242_vm5, %v1446_v58, 0.0 }
 0x3d0   : > { %1654 = vmatpush1.bf16.msra.mxu1 %v3088_v36  ;;  %vm1425_vm5 = vcmp.ge.s32.totalorder %v3843_v53, 2 }
 0x3d1   : > { %1353 = vst.msk [vmem:[#allocation2 + $0x30] sm:$0xff] %vm600_vm1, %v1345_v2  ;;  %v1346_v7 = vadd.f32 %v1336_v3, %v3386_v43  ;;  %2976 = vrot.lane.b32.xlu1 %v2975_v46, %s3185_s28  ;;  %v1454_v43 = vld [vmem:[#allocation2 + $0x1] sm:$0xff]  ;;  %1655 = vmatprep.subr.bf16.mxu1 %v3182_v6 }
 0x3d2   : > { %v1359_v21 = vld [vmem:[#allocation2 + $0x20] ss:$2 sm:$0xff]  ;;  %v1367_v9 = vld [vmem:[#allocation2 + $0x21] ss:$2 sm:$0xff]  ;;  %v1458_v34 = vsel %vm1426_vm3, %v1454_v43, 0.0 }
 0x3d3   : > { %v3807_v24 = vmax.f32 %v1359_v21, %v1367_v9  ;;  %1354 = vst.msk [vmem:[#allocation2 + $0x38] sm:$0xff] %vm600_vm1, %v1346_v7 }
 0x3d4   : > { %1656 = vmatpush1.bf16.msra.mxu1 %v3089_v15 }
 0x3d5   : > { %v1440_v41 = vmax.f32 %v3807_v24, 0.0 }
 0x3d6   : > { %v1455_v10 = vld [vmem:[#allocation2 + $0x9] sm:$0xff] }
 0x3d7   : > { %1444 = vst.msk [vmem:[#allocation2 + $0x12] sm:$0xff] %vm600_vm1, %v1440_v41  ;;  %v1459_v11 = vsel %vm1427_vm11, %v1455_v10, 0.0  ;;  %v1470_v30 = vld [vmem:[#allocation2 + $0x4] sm:$0xff] }
 0x3d8   : > { %v2980_v12 = vpack.i.bf16 %v1459_v11, %v1458_v34  ;;  %v1462_v32 = vld [vmem:[#allocation2 + $0x3] sm:$0xff]  ;;  %v1474_v44 = vsel %vm1434_vm13, %v1470_v30, 0.0 }
 0x3d9   : > { %v1466_v28 = vsel %vm1430_vm0, %v1462_v32, 0.0  ;;  %v1447_v59 = vld [vmem:[#allocation2 + $0x8] sm:$0xff] }
 0x3da   : > { %2981 = vrot.lane.b32.xlu0 %v2980_v12, %s3183_s26  ;;  %v1361_v16 = vld [vmem:[#allocation2 + $0x30] ss:$2 sm:$0xff]  ;;  %v1369_v19 = vld [vmem:[#allocation2 + $0x31] ss:$2 sm:$0xff]  ;;  %v1451_v57 = vsel %vm4241_vm6, %v1447_v59, 0.0  ;;  %vm1424_vm6 = vcmp.ge.s32.totalorder %v3840_v52, 2 }
 0x3db   : > { %v3823_v25 = vmax.f32 %v1361_v16, %v1369_v19 }
 0x3dd   : > { %v1441_v35 = vmax.f32 %v3823_v25, 0.0 }
 0x3de   : > { %v1471_v37 = vld [vmem:[#allocation2 + $0xc] sm:$0xff] }
 0x3df   : > { %v1463_v40 = vld [vmem:[#allocation2 + $0xb] sm:$0xff]  ;;  %v1475_v22 = vsel %vm1435_vm15, %v1471_v37, 0.0  ;;  %1445 = vst.msk [vmem:[#allocation2 + $0x1a] sm:$0xff] %vm600_vm1, %v1441_v35  ;;  %v2990_v54 = vpack.i.bf16 %v1441_v35, %v1440_v41 }
 0x3e0   : > { %v1467_v47 = vsel %vm1431_vm8, %v1463_v40, 0.0  ;;  %v1560_v49 = vpack.c.bf16 %v1475_v22, %v1474_v44  ;;  %v1456_v20 = vld [vmem:[#allocation2 + $0x11] sm:$0xff] }
 0x3e1   : > { %v2985_v51 = vpack.i.bf16 %v1467_v47, %v1466_v28  ;;  %v1460_v33 = vsel %vm1428_vm10, %v1456_v20, 0.0  ;;  %v1448_v34 = vld [vmem:[#allocation2 + $0x10] sm:$0xff] }
 0x3e2   : > { %2612 = vmatprep.mubr.msk.bf16.mxu1 %vm600_vm1, %v1560_v49  ;;  %v1452_v30 = vsel %vm1424_vm6, %v1448_v34, 0.0  ;;  %v3099_v34 = vld [vmem:[%s4216_s5 + $0x98] sm:$0xff]  }
 0x3e3   : > { %2986 = vrot.lane.b32.xlu0 %v2985_v51, %s3184_s27 }
 0x3e6   : > { %v1457_v55 = vld [vmem:[#allocation2 + $0x19] sm:$0xff] }
 0x3e7   : > { %2991 = vrot.lane.b32.xlu0 %v2990_v54, %s3185_s28  ;;  %v1464_v31 = vld [vmem:[#allocation2 + $0x13] sm:$0xff]  ;;  %v1465_v27 = vld [vmem:[#allocation2 + $0x1b] sm:$0xff]  ;;  %v1461_v26 = vsel %vm1429_vm12, %v1457_v55, 0.0 }
 0x3e8   : > { %v2995_v13 = vpack.i.bf16 %v1461_v26, %v1460_v33  ;;  %v1468_v8 = vsel %vm1432_vm2, %v1464_v31, 0.0  ;;  %v1469_v45 = vsel %vm4240_vm4, %v1465_v27, 0.0  ;;  %vm1437_vm4 = vcmp.lt.s32.totalorder %v3843_v53, 2  ;;  %v1472_v63 = vld [vmem:[#allocation2 + $0x14] sm:$0xff]  ;;  %v1473_v0 = vld [vmem:[#allocation2 + $0x1c] sm:$0xff]  ;;  %v3093_v26 = vld [vmem:[%s4216_s5 + $0x68] sm:$0xff]  }
 0x3e9   : > { %v3000_v18 = vpack.i.bf16 %v1469_v45, %v1468_v8  ;;  %v1476_v36 = vsel %vm1436_vm7, %v1472_v63, 0.0  ;;  %v1477_v21 = vsel %vm1437_vm4, %v1473_v0, 0.0  ;;  %v1449_v11 = vld [vmem:[#allocation2 + $0x18] sm:$0xff]  ;;  %v3090_v31 = vld [vmem:[%s4216_s5 + $0x50] sm:$0xff]   ;;  %v3092_v33 = vld [vmem:[%s4216_s5 + $0x60] sm:$0xff]  }
 0x3ea   : > { %2996 = vrot.lane.b32.xlu1 %v2995_v13, %s3183_s26  ;;  %v1562_v10 = vpack.c.bf16 %v1477_v21, %v1476_v36  ;;  %v1453_v32 = vsel %vm1425_vm5, %v1449_v11, 0.0  ;;  %1886 = vmatpush1.bf16.msra.mxu0 %v3090_v31  ;;  %v3091_v27 = vld [vmem:[%s4216_s5 + $0x58] sm:$0xff]   ;;  %v3094_v13 = vld [vmem:[%s4216_s5 + $0x70] sm:$0xff]   ;;  %v2601_v8 = vld [vmem:[%s4215_s4 + $0x1] ss:$0 sm:$0xff] }
 0x3eb   : > { %1887 = vmatprep.subr.bf16.mxu0 %v3182_v6  ;;  %v3095_v45 = vld [vmem:[%s4216_s5 + $0x78] sm:$0xff]  }
 0x3ee   : > { %3001 = vrot.lane.b32.xlu1 %v3000_v18, %s3184_s27  ;;  %1888 = vmatpush1.bf16.msra.mxu0 %v3091_v27 }
 0x3ef   : > { %1889 = vmatprep.subr.bf16.mxu0 %v3182_v6 }
 0x3f2   : > { %1890 = vmatpush1.bf16.msra.mxu0 %v3092_v33 }
 0x3f3   : > { %1891 = vmatprep.subr.bf16.mxu0 %v3182_v6 }
 0x3f6   : > { %1892 = vmatpush1.bf16.msra.mxu0 %v3093_v26 }
 0x3f7   : > { %1893 = vmatprep.subr.bf16.mxu0 %v3182_v6 }
 0x3fa   : > { %1894 = vmatpush1.bf16.msra.mxu0 %v3094_v13 }
 0x3fb   : > { %1895 = vmatprep.subr.bf16.mxu0 %v3182_v6 }
 0x3fe   : > { %1896 = vmatpush1.bf16.msra.mxu0 %v3095_v45 }
 0x3ff   : > { %1897 = vmatprep.subr.bf16.mxu0 %v3182_v6 }
 0x443   : > { %v2977_v60 = vpop.permute.xlu1 %2976 }
 0x444   : > { %v2979_v1 = vunpack.i.h.bf16 %v2977_v60  ;;  %v2978_v2 = vunpack.i.l.bf16 %v2977_v60 }
 0x44c   : > { %v2982_v50 = vpop.permute.xlu0 %2981 }
 0x44d   : > { %v2984_v23 = vunpack.i.h.bf16 %v2982_v50  ;;  %v2983_v56 = vunpack.i.l.bf16 %v2982_v50 }
 0x44f   : > { %v1526_v39 = vsel %vm600_vm1, %v1450_v14, %v2983_v56  ;;  %v1527_v62 = vsel %vm600_vm1, %v1451_v57, %v2984_v23 }
 0x450   : > { %v1530_v42 = vsel %vm777_vm14, %v1526_v39, %v2978_v2  ;;  %v1531_v7 = vsel %vm777_vm14, %v1527_v62, %v2979_v1  ;;  %v3096_v39 = vld [vmem:[%s4216_s5 + $0x80] sm:$0xff]   ;;  %v3097_v62 = vld [vmem:[%s4216_s5 + $0x88] sm:$0xff]  }
 0x451   : > { %1898 = vmatpush1.bf16.msra.mxu0 %v3096_v39 }
 0x452   : > { %1899 = vmatprep.subr.bf16.mxu0 %v3182_v6 }
 0x455   : > { %v2987_v3 = vpop.permute.xlu0 %2986  ;;  %1900 = vmatpush1.bf16.msra.mxu0 %v3097_v62 }
 0x456   : > { %v2989_v4 = vunpack.i.h.bf16 %v2987_v3  ;;  %v2988_v46 = vunpack.i.l.bf16 %v2987_v3  ;;  %v3098_v3 = vld [vmem:[%s4216_s5 + $0x90] sm:$0xff]   ;;  %1901 = vmatprep.subr.bf16.mxu0 %v3182_v6 }
 0x458   : > { %v1534_v9 = vsel %vm786_vm9, %v1530_v42, %v2988_v46  ;;  %v1535_v43 = vsel %vm786_vm9, %v1531_v7, %v2989_v4 }
 0x459   : > { %v1559_v41 = vpack.c.bf16 %v1535_v43, %v1534_v9  ;;  %v2992_v15 = vpop.permute.xlu0 %2991  ;;  %1902 = vmatpush1.bf16.msra.mxu0 %v3098_v3 }
 0x45a   : > { %v2994_v40 = vunpack.i.h.bf16 %v2992_v15  ;;  %v2993_v44 = vunpack.i.l.bf16 %v2992_v15  ;;  %1903 = vmatprep.subr.bf16.mxu0 %v3182_v6 }
 0x45b   : > { %1670 = vmatmul.mubr.bf16.vlgmr.msra.gmra.mrb[16].mxu1 %v1559_v41 }
 0x45c   : > { %2613 = vmatprep.mubr.msk.bf16.mxu1 %vm600_vm1, %v1562_v10  ;;  %v2997_v12 = vpop.permute.xlu1 %2996 }
 0x45d   : > { %v2999_v16 = vunpack.i.h.bf16 %v2997_v12  ;;  %v2998_v19 = vunpack.i.l.bf16 %v2997_v12  ;;  %1904 = vmatpush1.bf16.msra.mxu0 %v3099_v34 }
 0x45f   : > { %v1529_v35 = vsel %vm600_vm1, %v1453_v32, %v2999_v16  ;;  %v1528_v37 = vsel %vm600_vm1, %v1452_v30, %v2998_v19 }
 0x460   : > { %v3002_v22 = vpop.permute.xlu1 %3001  ;;  %v1532_v49 = vsel %vm777_vm14, %v1528_v37, %v2993_v44  ;;  %v1533_v51 = vsel %vm777_vm14, %v1529_v35, %v2994_v40 }
 0x461   : > { %v3004_v28 = vunpack.i.h.bf16 %v3002_v22  ;;  %v3003_v47 = vunpack.i.l.bf16 %v3002_v22 }
 0x463   : > { %v1536_v54 = vsel %vm786_vm9, %v1532_v49, %v3003_v47  ;;  %v1537_v20 = vsel %vm786_vm9, %v1533_v51, %v3004_v28 }
 0x464   : > { %v1561_v55 = vpack.c.bf16 %v1537_v20, %v1536_v54 }
 0x466   : > { %1678 = vmatmul.mubr.bf16.gmra.mrb[20].mxu1 %v1561_v55 }
 0x52e   : > { %v1671_v18 = vpop.f32.mrb[16].mxu1 }
 0x52f   : > { %v1672_v50 = vadd.f32 %v2601_v8, %v1671_v18  ;;  %v1673_v23 = vpop.f32.mrb[17].mxu1 }
 0x530   : > { %v1674_v56 = vpop.f32.mrb[18].mxu1 }
 0x531   : > { %v1686_v58 = vmax.f32 %v1672_v50, 0.0  ;;  %v1675_v59 = vadd.f32 %v2601_v8, %v1674_v56  ;;  %v1676_v60 = vpop.f32.mrb[19].mxu1 }
 0x533   : > { %1690 = vst.msk [vmem:[#allocation2 + $0x2] sm:$0xff] %vm600_vm1, %v1686_v58  ;;  %v1687_v14 = vmax.f32 %v1675_v59, 0.0 }
 0x535   : > { %v3005_v57 = vpack.i.bf16 %v1687_v14, %v1686_v58  ;;  %1691 = vst.msk [vmem:[#allocation2 + $0xa] sm:$0xff] %vm600_vm1, %v1687_v14 }
 0x537   : > { %3006 = vrot.lane.b32.xlu1 %v3005_v57, %s3185_s28 }
 0x539   : > { %v1679_v63 = vpop.f32.mrb[20].mxu1 }
 0x53a   : > { %v1702_v0 = vld [vmem:[#allocation2 + $0x1] sm:$0xff]  ;;  %v1680_v1 = vadd.f32 %v2601_v8, %v1679_v63  ;;  %v1681_v2 = vpop.f32.mrb[21].mxu1 }
 0x53b   : > { %v1682_v4 = vpop.f32.mrb[22].mxu1  ;;  %v1706_v21 = vsel %vm1426_vm3, %v1702_v0, 0.0  ;;  %vm4264_vm3 = vcmp.lt.s32.totalorder %v3843_v53, 3  ;;  %v1694_v26 = vld [vmem:[#allocation2] sm:$0xff] }
 0x53c   : > { %v1703_v46 = vld [vmem:[#allocation2 + $0x9] sm:$0xff]  ;;  %v1688_v42 = vmax.f32 %v1680_v1, 0.0  ;;  %v1683_v7 = vadd.f32 %v2601_v8, %v1682_v4  ;;  %v1684_v36 = vpop.f32.mrb[23].mxu1 }
 0x53d   : > { %v1707_v9 = vsel %vm1427_vm11, %v1703_v46, 0.0  ;;  %v1718_v11 = vld [vmem:[#allocation2 + $0x4] sm:$0xff]  ;;  %vm4265_vm11 = vcmp.ge.s32.totalorder %v3795_v48, 2 }
 0x53e   : > { %v3010_v43 = vpack.i.bf16 %v1707_v9, %v1706_v21  ;;  %1692 = vst.msk [vmem:[#allocation2 + $0x12] sm:$0xff] %vm600_vm1, %v1688_v42  ;;  %v1689_v41 = vmax.f32 %v1683_v7, 0.0  ;;  %v1710_v12 = vld [vmem:[#allocation2 + $0x3] sm:$0xff]  ;;  %v1722_v30 = vsel %vm1434_vm13, %v1718_v11, 0.0  ;;  %v1698_v45 = vsel %vm4265_vm11, %v1694_v26, 0.0 }
 0x53f   : > { %v1714_v6 = vsel %vm1430_vm0, %v1710_v12, 0.0  ;;  %v1695_v13 = vld [vmem:[#allocation2 + $0x8] sm:$0xff]  ;;  %vm4266_vm13 = vcmp.ge.s32.totalorder %v3798_v5, 2 }
 0x540   : > { %3011 = vrot.lane.b32.xlu0 %v3010_v43, %s3183_s26  ;;  %v3020_v10 = vpack.i.bf16 %v1689_v41, %v1688_v42  ;;  %1693 = vst.msk [vmem:[#allocation2 + $0x1a] sm:$0xff] %vm600_vm1, %v1689_v41  ;;  %v1699_v18 = vsel %vm4266_vm13, %v1695_v13, 0.0 }
 0x545   : > { %v1719_v15 = vld [vmem:[#allocation2 + $0xc] sm:$0xff] }
 0x546   : > { %v1711_v16 = vld [vmem:[#allocation2 + $0xb] sm:$0xff]  ;;  %v1723_v32 = vsel %vm1435_vm15, %v1719_v15, 0.0  ;;  %vm3187_vm15 = vmmov 0  }
 0x547   : > { %v1704_v19 = vld [vmem:[#allocation2 + $0x11] sm:$0xff]  ;;  %v1715_v35 = vsel %vm1431_vm8, %v1711_v16, 0.0  ;;  %v1808_v37 = vpack.c.bf16 %v1723_v32, %v1722_v30  ;;  %v1705_v44 = vld [vmem:[#allocation2 + $0x19] sm:$0xff] }
 0x548   : > { %v3015_v40 = vpack.i.bf16 %v1715_v35, %v1714_v6  ;;  %v1712_v22 = vld [vmem:[#allocation2 + $0x13] sm:$0xff]  ;;  %v1713_v28 = vld [vmem:[#allocation2 + $0x1b] sm:$0xff]  ;;  %v1708_v47 = vsel %vm1428_vm10, %v1704_v19, 0.0  ;;  %v1709_v49 = vsel %vm1429_vm12, %v1705_v44, 0.0  ;;  %v3186_v35 = vmov 0.0  }
 0x549   : > { %2646 = vmatprep.mubr.msk.bf16.mxu0 %vm600_vm1, %v1808_v37  ;;  %v3025_v51 = vpack.i.bf16 %v1709_v49, %v1708_v47  ;;  %v1716_v54 = vsel %vm1432_vm2, %v1712_v22, 0.0  ;;  %v1717_v20 = vsel %vm4264_vm3, %v1713_v28, 0.0  ;;  %v1720_v50 = vld [vmem:[#allocation2 + $0x14] sm:$0xff]  ;;  %v1721_v23 = vld [vmem:[#allocation2 + $0x1c] sm:$0xff]  ;;  %2754 = vmatprep.subr.bf16.mxu1 %v3186_v35 }
 0x54a   : > { %3016 = vrot.lane.b32.xlu0 %v3015_v40, %s3184_s27  ;;  %v3030_v55 = vpack.i.bf16 %v1717_v20, %v1716_v54  ;;  %v1696_v62 = vld [vmem:[#allocation2 + $0x10] sm:$0xff]  ;;  %v1697_v63 = vld [vmem:[#allocation2 + $0x18] sm:$0xff]  ;;  %v1724_v48 = vsel %vm1436_vm7, %v1720_v50, 0.0  ;;  %v1725_v5 = vsel %vm1437_vm4, %v1721_v23, 0.0  ;;  %2770 = vmatprep.subr.bf16.mxu0 %v3186_v35  ;;  %v3102_v40 = vld [vmem:[%s4214_s3 + $0xc0] sm:$0xff]  }
 0x54b   : > { %3026 = vrot.lane.b32.xlu1 %v3025_v51, %s3183_s26  ;;  %v1700_v36 = vsel %vm1424_vm6, %v1696_v62, 0.0  ;;  %v1701_v21 = vsel %vm1425_vm5, %v1697_v63, 0.0  ;;  %v1810_v43 = vpack.c.bf16 %v1725_v5, %v1724_v48  ;;  %v3100_v6 = vld [vmem:[%s4214_s3 + $0xb0] sm:$0xff]   ;;  %v3101_v37 = vld [vmem:[%s4214_s3 + $0xb8] sm:$0xff]   ;;  %v2635_v44 = vld [vmem:[%s4217_s6 + $0x1] ss:$0 sm:$0xff]  ;;  %2766 = vmatprep.mubr.msk.bf16.mxu1 %vm3187_vm15, %v3186_v35 }
 0x54c   : > { %2755 = vmatpush3.bf16.msra.mxu1 %v3100_v6  ;;  %v1952_v62 = vand.u32 1, %v3331_v17  ;;  %v3114_v63 = vld [vmem:[%s4216_s5 + $0x110] sm:$0xff]  }
 0x54d   : > { %2756 = vmatprep.subr.bf16.mxu1 %v3186_v35 }
 0x54e   : > { %3021 = vrot.lane.b32.xlu0 %v3020_v10, %s3185_s28  ;;  %vm4043_vm0 = vcmp.lt.s32.totalorder %v1952_v62, 1  ;;  %vm4056_vm10 = vcmp.ge.s32.totalorder %v1952_v62, 1  ;;  %v3112_v62 = vld [vmem:[%s4214_s3 + $0x110] sm:$0xff]  }
 0x54f   : > { %3031 = vrot.lane.b32.xlu1 %v3030_v55, %s3184_s27  ;;  %s2461_s27 = scalar_lea.sflag [#allocation4], %s324_s21 }
 0x550   : > { %2757 = vmatpush3.bf16.msra.mxu1 %v3101_v37  ;;  %v3110_v37 = vld [vmem:[%s4216_s5 + $0xd0] sm:$0xff]  }
 0x551   : > { %2758 = vmatprep.subr.bf16.mxu1 %v3186_v35 }
 0x554   : > { %2759 = vmatpush3.bf16.msra.mxu1 %v3102_v40 }
 0x555   : > { %2760 = vmatprep.subr.bf16.mxu1 %v3186_v35 }
 0x5a9   : > { %v3007_v8 = vpop.permute.xlu1 %3006 }
 0x5aa   : > { %v3009_v59 = vunpack.i.h.bf16 %v3007_v8  ;;  %v3008_v60 = vunpack.i.l.bf16 %v3007_v8 }
 0x5b2   : > { %v3012_v31 = vpop.permute.xlu0 %3011 }
 0x5b3   : > { %v3014_v27 = vunpack.i.h.bf16 %v3012_v31  ;;  %v3013_v33 = vunpack.i.l.bf16 %v3012_v31 }
 0x5b5   : > { %v1774_v56 = vsel %vm600_vm1, %v1698_v45, %v3013_v33  ;;  %v1775_v58 = vsel %vm600_vm1, %v1699_v18, %v3014_v27 }
 0x5b6   : > { %v1778_v0 = vsel %vm777_vm14, %v1774_v56, %v3008_v60  ;;  %v1779_v1 = vsel %vm777_vm14, %v1775_v58, %v3009_v59  ;;  %v3103_v56 = vld [vmem:[%s4214_s3 + $0xc8] sm:$0xff]  }
 0x5b7   : > { %2761 = vmatpush3.bf16.msra.mxu1 %v3103_v56 }
 0x5b8   : > { %2762 = vmatprep.subr.bf16.mxu1 %v3186_v35 }
 0x5bc   : > { %v3017_v14 = vpop.permute.xlu0 %3016 }
 0x5bd   : > { %v3019_v57 = vunpack.i.h.bf16 %v3017_v14  ;;  %v3018_v39 = vunpack.i.l.bf16 %v3017_v14  ;;  %v3027_v2 = vpop.permute.xlu1 %3026 }
 0x5be   : > { %v3029_v46 = vunpack.i.h.bf16 %v3027_v2  ;;  %v3028_v42 = vunpack.i.l.bf16 %v3027_v2 }
 0x5bf   : > { %v1782_v3 = vsel %vm786_vm9, %v1778_v0, %v3018_v39  ;;  %v1783_v4 = vsel %vm786_vm9, %v1779_v1, %v3019_v57  ;;  %v1959_v57 = vand.u32 1, %v3351_v29  ;;  %v3105_v39 = vld [vmem:[%s4214_s3 + $0xd8] sm:$0xff]  }
 0x5c0   : > { %v1807_v7 = vpack.c.bf16 %v1783_v4, %v1782_v3  ;;  %v3022_v9 = vpop.permute.xlu0 %3021  ;;  %v1777_v41 = vsel %vm600_vm1, %v1701_v21, %v3029_v46  ;;  %v1776_v10 = vsel %vm600_vm1, %v1700_v36, %v3028_v42  ;;  %v3113_v29 = vld [vmem:[%s4214_s3 + $0x118] sm:$0xff]  }
 0x5c1   : > { %v3024_v34 = vunpack.i.h.bf16 %v3022_v9  ;;  %v3023_v11 = vunpack.i.l.bf16 %v3022_v9  ;;  %v3032_v12 = vpop.permute.xlu1 %3031  ;;  %vm4047_vm8 = vcmp.lt.s32.totalorder %v1959_v57, 1  ;;  %vm4060_vm12 = vcmp.ge.s32.totalorder %v1959_v57, 1 }
 0x5c2   : > { %1918 = vmatmul.mubr.bf16.vlgmr.msra.gmra.mrb[24].mxu0 %v1807_v7  ;;  %v3034_v19 = vunpack.i.h.bf16 %v3032_v12  ;;  %v3033_v52 = vunpack.i.l.bf16 %v3032_v12 }
 0x5c3   : > { %v1781_v15 = vsel %vm777_vm14, %v1777_v41, %v3024_v34  ;;  %v1780_v16 = vsel %vm777_vm14, %v1776_v10, %v3023_v11  ;;  %2647 = vmatprep.mubr.msk.bf16.mxu0 %vm600_vm1, %v1810_v43 }
 0x5c4   : > { %v1784_v53 = vsel %vm786_vm9, %v1780_v16, %v3033_v52  ;;  %v1785_v30 = vsel %vm786_vm9, %v1781_v15, %v3034_v19  ;;  %v3106_v19 = vld [vmem:[%s4216_s5 + $0xb0] sm:$0xff]   ;;  %v3107_v52 = vld [vmem:[%s4216_s5 + $0xb8] sm:$0xff]  }
 0x5c5   : > { %v1809_v32 = vpack.c.bf16 %v1785_v30, %v1784_v53  ;;  %2771 = vmatpush3.bf16.msra.mxu0 %v3106_v19  ;;  %v3108_v53 = vld [vmem:[%s4216_s5 + $0xc0] sm:$0xff]   ;;  %v3117_v19 = vld [vmem:[%s4218_s7 + $0x8] sm:$0xff]  }
 0x5c6   : > { %2772 = vmatprep.subr.bf16.mxu0 %v3186_v35  ;;  %v2661_v30 = vld [vmem:[%s4215_s4 + $0x2] ss:$0 sm:$0xff] }
 0x5c9   : > { %2773 = vmatpush3.bf16.msra.mxu0 %v3107_v52 }
 0x5ca   : > { %1926 = vmatmul.mubr.bf16.gmra.mrb[28].mxu0 %v1809_v32  ;;  %2774 = vmatprep.subr.bf16.mxu0 %v3186_v35  ;;  %v3109_v32 = vld [vmem:[%s4216_s5 + $0xc8] sm:$0xff]  }
 0x5cb   : > { %2782 = vmatprep.mubr.msk.bf16.mxu0 %vm3187_vm15, %v3186_v35 }
 0x5cd   : > { %2775 = vmatpush3.bf16.msra.mxu0 %v3108_v53 }
 0x5ce   : > { %2776 = vmatprep.subr.bf16.mxu0 %v3186_v35 }
 0x5d1   : > { %2777 = vmatpush3.bf16.msra.mxu0 %v3109_v32 }
 0x5d2   : > { %2778 = vmatprep.subr.bf16.mxu0 %v3186_v35 }
 0x5d5   : > { %2779 = vmatpush3.bf16.msra.mxu0 %v3110_v37 }
 0x5d6   : > { %2780 = vmatprep.subr.bf16.mxu0 %v3186_v35 }
 0x695   : > { %v1919_v22 = vpop.f32.mrb[24].mxu0 }
 0x696   : > { %v1920_v28 = vadd.f32 %v2635_v44, %v1919_v22  ;;  %v1921_v47 = vpop.f32.mrb[25].mxu0 }
 0x697   : > { %v1922_v49 = vpop.f32.mrb[26].mxu0 }
 0x698   : > { %v1934_v51 = vadd.f32 %v1920_v28, %v3770_v38  ;;  %v1923_v54 = vadd.f32 %v2635_v44, %v1922_v49  ;;  %v1924_v20 = vpop.f32.mrb[27].mxu0 }
 0x699   : > { %v3111_v20 = vld [vmem:[%s4216_s5 + $0xd8] sm:$0xff]  }
 0x69a   : > { %1938 = vst.msk [vmem:[#allocation2] sm:$0xff] %vm600_vm1, %v1934_v51  ;;  %v1935_v55 = vadd.f32 %v1923_v54, %v3785_v61  ;;  %2781 = vmatpush3.bf16.msra.mxu0 %v3111_v20 }
 0x69b   : > { %2794 = vmatprep.subr.bf16.mxu0 %v3186_v35 }
 0x69c   : > { %1939 = vst.msk [vmem:[#allocation2 + $0x8] sm:$0xff] %vm600_vm1, %v1935_v55 }
 0x69d   : > { %v1927_v31 = vpop.f32.mrb[28].mxu0 }
 0x69e   : > { %v1928_v27 = vadd.f32 %v2635_v44, %v1927_v31  ;;  %v1929_v33 = vpop.f32.mrb[29].mxu0 }
 0x69f   : > { %v1930_v26 = vpop.f32.mrb[30].mxu0 }
 0x6a0   : > { %v1936_v13 = vadd.f32 %v1928_v27, %v3807_v24  ;;  %v1931_v8 = vadd.f32 %v2635_v44, %v1930_v26  ;;  %v1932_v45 = vpop.f32.mrb[31].mxu0  ;;  %v3104_v24 = vld [vmem:[%s4214_s3 + $0xd0] sm:$0xff]  }
 0x6a1   : > { %2763 = vmatpush3.bf16.msra.mxu1 %v3104_v24 }
 0x6a2   : > { %1940 = vst.msk [vmem:[#allocation2 + $0x10] sm:$0xff] %vm600_vm1, %v1936_v13  ;;  %v1937_v38 = vadd.f32 %v1931_v8, %v3823_v25  ;;  %2764 = vmatprep.subr.bf16.mxu1 %v3186_v35 }
 0x6a3   : > { %v1942_v18 = vld [vmem:[#allocation2] ss:$2 sm:$0xff]  ;;  %v1944_v50 = vld [vmem:[#allocation2 + $0x1] ss:$2 sm:$0xff] }
 0x6a4   : > { %1941 = vst.msk [vmem:[#allocation2 + $0x18] sm:$0xff] %vm600_vm1, %v1937_v38  ;;  %v4016_v23 = vmax.f32 %v1942_v18, %v1944_v50 }
 0x6a5   : > { %2765 = vmatpush3.bf16.msra.mxu1 %v3105_v39 }
 0x6a6   : > { %v1976_v61 = vmax.f32 %v4016_v23, 0.0  ;;  %2786 = vmatprep.subr.bf16.mxu1 %v3186_v35 }
 0x6a8   : > { %1978 = vst.msk [vmem:[#allocation2 + $0x2] sm:$0xff] %vm600_vm1, %v1976_v61 }
 0x6ab   : > { %v1943_v25 = vld [vmem:[#allocation2 + $0x10] ss:$2 sm:$0xff]  ;;  %v1945_v58 = vld [vmem:[#allocation2 + $0x11] ss:$2 sm:$0xff] }
 0x6ac   : > { %v4027_v59 = vmax.f32 %v1943_v25, %v1945_v58 }
 0x6ae   : > { %v1977_v60 = vmax.f32 %v4027_v59, 0.0 }
 0x6af   : > { %v1980_v7 = vld [vmem:[#allocation2 + $0x1] sm:$0xff] }
 0x6b0   : > { %v3035_v14 = vpack.i.bf16 %v1977_v60, %v1976_v61  ;;  %1979 = vst.msk [vmem:[#allocation2 + $0xa] sm:$0xff] %vm600_vm1, %v1977_v60  ;;  %v1982_v9 = vsel %vm4056_vm10, %v1980_v7, 0.0 }
 0x6b2   : > { %3036 = vrot.lane.b32.xlu0 %v3035_v14, %s3183_s26 }
 0x6b7   : > { %v1984_v48 = vld [vmem:[#allocation2 + $0x3] sm:$0xff]  ;;  %v1985_v5 = vld [vmem:[#allocation2 + $0xb] sm:$0xff] }
 0x6b8   : > { %v1986_v0 = vsel %vm4043_vm0, %v1984_v48, 0.0  ;;  %v1987_v17 = vsel %vm4047_vm8, %v1985_v5, 0.0  ;;  %v1981_v36 = vld [vmem:[#allocation2 + $0x9] sm:$0xff]  ;;  %v2682_v48 = vld [vmem:[%s4217_s6 + $0x2] ss:$0 sm:$0xff] }
 0x6b9   : > { %v3040_v1 = vpack.i.bf16 %v1987_v17, %v1986_v0  ;;  %v1983_v43 = vsel %vm4060_vm12, %v1981_v36, 0.0 }
 0x6bb   : > { %3041 = vrot.lane.b32.xlu1 %v3040_v1, %s3185_s28 }
 0x724   : > { %v3037_v2 = vpop.permute.xlu0 %3036 }
 0x725   : > { %v3039_v46 = vunpack.i.h.bf16 %v3037_v2  ;;  %v3038_v42 = vunpack.i.l.bf16 %v3037_v2 }
 0x727   : > { %v2004_v34 = vsel %vm600_vm1, %v1982_v9, %v3038_v42  ;;  %v2005_v11 = vsel %vm600_vm1, %v1983_v43, %v3039_v46  ;;  %v2695_v43 = vld [vmem:[%s4215_s4 + $0x3] ss:$0 sm:$0xff] }
 0x72d   : > { %v3042_v21 = vpop.permute.xlu1 %3041 }
 0x72e   : > { %v3044_v41 = vunpack.i.h.bf16 %v3042_v21  ;;  %v3043_v10 = vunpack.i.l.bf16 %v3042_v21 }
 0x730   : > { %v2006_v12 = vsel %vm777_vm14, %v2004_v34, %v3043_v10  ;;  %v2007_v15 = vsel %vm777_vm14, %v2005_v11, %v3044_v41 }
 0x731   : > { %v2021_v16 = vpack.c.bf16 %v2007_v15, %v2006_v12 }
 0x733   : > { %2767 = vmatmul.mubr.msk.bf16.vlgmr.msra.gmra.mrb[24].mxu1 %vm786_vm9, %v2021_v16 }
 0x734   : > { %2790 = vmatprep.mubr.msk.bf16.mxu1 %vm3187_vm15, %v3186_v35  ;;  %2787 = vmatpush3.bf16.msra.mxu1 %v3112_v62 }
 0x735   : > { %2788 = vmatprep.subr.bf16.mxu1 %v3186_v35 }
 0x738   : > { %2789 = vmatpush3.bf16.msra.mxu1 %v3113_v29 }
 0x739   : > { %2802 = vmatprep.subr.bf16.mxu1 %v3186_v35 }
 0x806   : > { %v2103_v6 = vpop.f32.mrb[24].mxu1 }
 0x807   : > { %v2104_v40 = vadd.f32 %v2661_v30, %v2103_v6  ;;  %v2768_v44 = vpop.f32.mrb[25].mxu1 }
 0x808   : > { %v2106_v22 = vpop.f32.mrb[26].mxu1  ;;  %v2708_v44 = vld [vmem:[%s4219_s8] ss:$0 sm:$0xff] }
 0x809   : > { %v2110_v28 = vmax.f32 %v2104_v40, 0.0  ;;  %v2107_v47 = vadd.f32 %v2661_v30, %v2106_v22  ;;  %v2769_v49 = vpop.f32.mrb[27].mxu1 }
 0x80b   : > { %2112 = vst.msk [vmem:[#allocation2 + $0x2] sm:$0xff] %vm600_vm1, %v2110_v28  ;;  %v2111_v51 = vmax.f32 %v2107_v47, 0.0 }
 0x80d   : > { %v3045_v54 = vpack.i.bf16 %v2111_v51, %v2110_v28  ;;  %2113 = vst.msk [vmem:[#allocation2 + $0xa] sm:$0xff] %vm600_vm1, %v2111_v51 }
 0x80f   : > { %3046 = vrot.lane.b32.xlu0 %v3045_v54, %s3183_s26  ;;  %s2474_s26 = sshll.u32 %s326_s29, 4  ;;  %s4171_s26 = int_to_ptr.vmem [resolvable:$true] %s2474_s26 }
 0x810   : > { %s3118_s13 = scalar_lea.vmem %s4171_s26, 128  ;;  %p3125_p0 = scmp.lt.s32.totalorder %s4171_s26, %s3123_s22 }
 0x811   : > { %p3119_p11 = scmp.ne.s32.totalorder %s4171_s26, %s3118_s13  ;;  %p3126_p1 = scmp.lt.s32.totalorder %s3124_s23, %s3118_s13 }
 0x812   : > { %v2114_v8 = vld [vmem:[#allocation2 + $0x1] sm:$0xff] }
 0x813   : > { %v2116_v61 = vsel %vm4056_vm10, %v2114_v8, 0.0  ;;  %p3120_p12 = pnand %p3119_p11, %p3277_p5  ;;  %p3127_p2 = por %p3126_p1, %p3125_p0 }
 0x814   : > { %v2118_v55 = vld [vmem:[#allocation2 + $0x3] sm:$0xff]  ;;  %v2119_v31 = vld [vmem:[#allocation2 + $0xb] sm:$0xff] }
 0x815   : > { %v2120_v27 = vsel %vm4043_vm0, %v2118_v55, 0.0  ;;  %v2121_v33 = vsel %vm4047_vm8, %v2119_v31, 0.0  ;;  %v2115_v18 = vld [vmem:[#allocation2 + $0x9] sm:$0xff]  ;;  %p3121_p13 = pneg %p3120_p12 }
 0x816   : > { %v3050_v26 = vpack.i.bf16 %v2121_v33, %v2120_v27  ;;  %v2117_v56 = vsel %vm4060_vm12, %v2115_v18, 0.0 }
 0x817   : > { %p3128_p3 = pnand %p3127_p2, %p3121_p13 }
 0x818   : > { %3051 = vrot.lane.b32.xlu1 %v3050_v26, %s3185_s28 }
 0x881   : > { %v3047_v13 = vpop.permute.xlu0 %3046 }
 0x882   : > { %v3049_v45 = vunpack.i.h.bf16 %v3047_v13  ;;  %v3048_v38 = vunpack.i.l.bf16 %v3047_v13 }
 0x884   : > { %v2138_v58 = vsel %vm600_vm1, %v2116_v61, %v3048_v38  ;;  %v2139_v60 = vsel %vm600_vm1, %v2117_v56, %v3049_v45 }
 0x88a   : > { %v3052_v50 = vpop.permute.xlu1 %3051 }
 0x88b   : > { %v3054_v24 = vunpack.i.h.bf16 %v3052_v50  ;;  %v3053_v25 = vunpack.i.l.bf16 %v3052_v50 }
 0x88d   : > { %v2140_v14 = vsel %vm777_vm14, %v2138_v58, %v3053_v25  ;;  %v2141_v57 = vsel %vm777_vm14, %v2139_v60, %v3054_v24 }
 0x88e   : > { %v2155_v39 = vpack.c.bf16 %v2141_v57, %v2140_v14 }
 0x890   : > { %2783 = vmatmul.mubr.msk.bf16.vlgmr.msra.gmra.mrb[32].mxu0 %vm786_vm9, %v2155_v39 }
 0x891   : > { %2798 = vmatprep.mubr.msk.bf16.mxu0 %vm3187_vm15, %v3186_v35  ;;  %2795 = vmatpush3.bf16.msra.mxu0 %v3114_v63 }
 0x892   : > { %2796 = vmatprep.subr.bf16.mxu0 %v3186_v35 }
 0x963   : > { %v2237_v5 = vpop.f32.mrb[32].mxu0 }
 0x964   : > { %v2238_v0 = vadd.f32 %v2682_v48, %v2237_v5  ;;  %v2784_v17 = vpop.f32.mrb[33].mxu0 }
 0x965   : > { %v2240_v1 = vpop.f32.mrb[34].mxu0 }
 0x966   : > { %v2244_v2 = vadd.f32 %v2238_v0, %v4016_v23  ;;  %v2241_v3 = vadd.f32 %v2682_v48, %v2240_v1  ;;  %v2785_v4 = vpop.f32.mrb[35].mxu0  ;;  %v3115_v23 = vld [vmem:[%s4216_s5 + $0x118] sm:$0xff]  }
 0x967   : > { %2797 = vmatpush3.bf16.msra.mxu0 %v3115_v23 }
 0x968   : > { %2246 = vst.msk [vmem:[#allocation2] sm:$0xff] %vm600_vm1, %v2244_v2  ;;  %v2245_v46 = vadd.f32 %v2241_v3, %v4027_v59  ;;  %v3116_v59 = vld [vmem:[%s4218_s7] sm:$0xff]  }
 0x96a   : > { %2247 = vst.msk [vmem:[#allocation2 + $0x8] sm:$0xff] %vm600_vm1, %v2245_v46 }
 0x971   : > { %v2248_v42 = vld [vmem:[#allocation2] ss:$2 sm:$0xff]  ;;  %v2249_v7 = vld [vmem:[#allocation2 + $0x1] ss:$2 sm:$0xff] }
 0x972   : > { %v2250_v36 = vmax.f32 %v2248_v42, %v2249_v7 }
 0x974   : > { %v2251_v21 = vmax.f32 %v2250_v36, 0.0 }
 0x976   : > { %v2257_v9 = vpack.c.bf16 %v2251_v21, %v2251_v21 }
 0x978   : > { %2791 = vmatmul.mubr.msk.bf16.vlgmr.msra.gmra.mrb[28].mxu1 %vm600_vm1, %v2257_v9 }
 0x979   : > { %2806 = vmatprep.mubr.msk.bf16.mxu1 %vm3187_vm15, %v3186_v35  ;;  %2803 = vmatpush3.bf16.msra.mxu1 %v3116_v59 }
 0x97a   : > { %2804 = vmatprep.subr.bf16.mxu1 %v3186_v35  ;;  %v2704_v35 = vld [vmem:[%s4217_s6 + $0x3] ss:$0 sm:$0xff] }
 0x97d   : > { %2805 = vmatpush3.bf16.msra.mxu1 %v3117_v19 }
 0xa4b   : > { %v2315_v41 = vpop.f32.mrb[28].mxu1 }
 0xa4c   : > { %v2316_v10 = vadd.f32 %v2695_v43, %v2315_v41  ;;  %v2792_v34 = vpop.f32.mrb[29].mxu1 }
 0xa4d   : > { %v2318_v11 = vpop.f32.mrb[30].mxu1 }
 0xa4e   : > { %v2321_v12 = vmax.f32 %v2316_v10, 0.0  ;;  %v2793_v15 = vpop.f32.mrb[31].mxu1 }
 0xa50   : > { %v2327_v16 = vpack.c.bf16 %v2321_v12, %v2321_v12 }
 0xa52   : > { %2799 = vmatmul.mubr.msk.bf16.vlgmr.msra.gmra.mrb[36].mxu0 %vm600_vm1, %v2327_v16 }
 0xb25   : > { %v2385_v52 = vpop.f32.mrb[36].mxu0 }
 0xb26   : > { %v2386_v53 = vadd.f32 %v2704_v35, %v2385_v52  ;;  %v2800_v30 = vpop.f32.mrb[37].mxu0 }
 0xb27   : > { %v2388_v32 = vpop.f32.mrb[38].mxu0 }
 0xb28   : > { %v2391_v6 = vadd.f32 %v2386_v53, %v2250_v36  ;;  %v2801_v37 = vpop.f32.mrb[39].mxu0 }
 0xb2a   : > { %v2392_v40 = vpack.c.bf16 %v2391_v6, %v2391_v6 }
 0xb2c   : > { %2807 = vmatmul.mubr.msk.bf16.vlgmr.msra.gmra.mrb[32].mxu1 %vm600_vm1, %v2392_v40 }
 0xbff   : > { %v2453_v22 = vpop.f32.mrb[32].mxu1 }
 0xc00   : > { %v2454_v28 = vadd.f32 %v2708_v44, %v2453_v22  ;;  %v2808_v47 = vpop.f32.mrb[33].mxu1 }
 0xc01   : > { %v2456_v49 = vpop.f32.mrb[34].mxu1 }
 0xc02   : > { %2459 = vst [vmem:[%s326_s29] sm:$0xff] %v2454_v28  ;;  %v2809_v51 = vpop.f32.mrb[35].mxu1 }
 0xc03   : > { %3131 = shalt.err (!%p3128_p3)
}
 0xc04   : > { %s3132_s21 = scalar_lea.hbm %s4169_s16, 128  ;;  %s3136_s29 = scalar_lea.hbm %s4220_s9, 256 }
 0xc05   : > { %p3133_p4 = scmp.ne.s32.totalorder %s4169_s16, %s3132_s21  ;;  %p3137_p9 = scmp.lt.u32.totalorder %s4169_s16, %s4220_s9 }
 0xc06   : > { %p3138_p10 = scmp.lt.u32.totalorder %s3136_s29, %s3132_s21  ;;  %p3140_p12 = scmp.lt.u32.totalorder %s3132_s21, %s4169_s16 }
 0xc07   : > { %p3134_p7 = pnand %p3133_p4, %p3277_p5 }
 0xc08   : > { %p3139_p11 = por %p3138_p10, %p3137_p9 }
 0xc09   : > { %p3135_p8 = pneg %p3134_p7 }
 0xc0a   : > { %p3141_p13 = por %p3140_p12, %p3139_p11 }
 0xc0c   : > { %p3142_p0 = pnand %p3141_p13, %p3135_p8 }
 0xc0e   : > { %3145 = shalt.err (!%p3142_p0)
}
 0xc0f   : > { %2810 = dma.vmem_to_hbm [thread:$0]  (%p3277_p5), %s4171_s26, 128, %s4169_s16, %s2461_s27  }
 0xc10 PF: > { %p2816_p1 = scmp.ge.s32.totalorder %s3180_s12, 2  ;;  %s2486_s13 = sand.u32 1, %s3168_s30  }
 0xc11   : > { %s2487_s17 = scalar_lea.sflag [#allocation4], %s2486_s13 }
 0xc12   : > { %p2813_p2 = pnand %p2816_p1, %p3281_p6 }
 0xc14   : > { %3163 = dma.done.wait (!%p2813_p2), %s2487_s17, 128  }
 0xc15   : > { %3165 = vsyncadd (!%p2813_p2), %s2487_s17, 4294967168  ;;  %p19_p3 = scmp.ge.s32.totalorder %s3264_s15, 4   ;;  %s4275_s30 = smov %s3172_s10 }
 0xc16   : > { %s4276_s10 = smov %s3176_s11  ;;  %s4277_s11 = smov %s3275_s18 }
 0xc17   : > { %s4278_s12 = smov %s3264_s15  ;;  %21 = sbr.rel (!%p19_p3) target bundleno = 3 (0x3), region = 110 }
 0xc1e   :  { %2492 = vsyncpa [#allocation4], 1 }
 0xc1f   :  { %2494 = vsyncpa [#allocation4 + $0x1], 1 }

</bundles_post_ra>
